<compile_context>
chip_gen: v7x
topology: tpu7x:2x2x1
jax: 0.10.0
libtpu: 0.0.40
codegen_flags: <defaults>
</compile_context>

<pallas_src>
import jax
import jax.numpy as jnp
from jax import lax
from jax.experimental import pallas as pl
from jax.experimental.pallas import tpu as pltpu

EPS = 1e-5  # PyTorch BatchNorm2d default


# ----------------------------------------------------------------------------
# Fused kernel: one (batch, row-tile) step.
# ----------------------------------------------------------------------------
def _fused_dense_block_kernel(xt_ref, xc_ref, xb_ref,
                              s1_ref, b1_ref, w1_ref, cb1_ref,
                              s2_ref, b2_ref, w2_ref, cb2_ref,
                              o_ref, mid_ref):
    i = pl.program_id(1)
    n_row_tiles = pl.num_programs(1)

    TH, W, Cin = xc_ref.shape[1], xc_ref.shape[2], xc_ref.shape[3]
    Cmid = w1_ref.shape[1]
    Cout = w2_ref.shape[1]
    mm_dtype = w1_ref.dtype  # matmul operand dtype (f32 or bf16)

    def bn_relu_conv1_bn_relu(x_rows):
        # x_rows: (r, W, Cin) f32 -> (r, W, Cmid) f32
        r = x_rows.shape[0]
        h = jnp.maximum(x_rows.reshape(r * W, Cin) * s1_ref[...] + b1_ref[...], 0.0)
        y = jnp.dot(h.astype(mm_dtype), w1_ref[...],
                    preferred_element_type=jnp.float32) + cb1_ref[...]
        y = jnp.maximum(y * s2_ref[...] + b2_ref[...], 0.0)
        return y.reshape(r, W, Cmid)

    # Zero-padded mid activation lives entirely in VMEM (never touches HBM).
    mid_ref[...] = jnp.zeros(mid_ref.shape, mid_ref.dtype)
    mid_ref[1:TH + 1, 1:W + 1, :] = bn_relu_conv1_bn_relu(xc_ref[0])

    # Halo rows (recomputed per tile; only written when they exist in-image).
    top = bn_relu_conv1_bn_relu(xt_ref[0])
    bot = bn_relu_conv1_bn_relu(xb_ref[0])

    @pl.when(i > 0)
    def _():
        mid_ref[0:1, 1:W + 1, :] = top

    @pl.when(i < n_row_tiles - 1)
    def _():
        mid_ref[TH + 1:TH + 2, 1:W + 1, :] = bot

    # 3x3 SAME conv as a single im2col MXU matmul: (TH*W, 9*Cmid) @ (9*Cmid, Cout)
    patches = [
        mid_ref[ky:ky + TH, kx:kx + W, :].reshape(TH * W, Cmid)
        for ky in range(3) for kx in range(3)
    ]
    pm = jnp.concatenate(patches, axis=1).astype(mm_dtype)
    conv = jnp.dot(pm, w2_ref[...], preferred_element_type=jnp.float32) + cb2_ref[...]

    # Fused channel concat: one full-width store of (TH, W, Cin + Cout).
    o_ref[0] = jnp.concatenate(
        [xc_ref[0].astype(o_ref.dtype),
         conv.reshape(TH, W, Cout).astype(o_ref.dtype)],
        axis=-1)


# ----------------------------------------------------------------------------
# Tile-size selection (conservative VMEM budget, valid across v5e/v6e/v7x).
# ----------------------------------------------------------------------------
def _vmem_estimate_bytes(th, W, Cin, Cmid, Cout, mm_itemsize):
    f32 = 4
    x_tiles = 2 * th * W * Cin * f32 + 4 * W * Cin * f32       # double-buffered x + halos
    out_tile = 2 * th * W * (Cin + Cout) * f32                 # double-buffered output
    mid = (th + 2) * (W + 2) * Cmid * f32                      # padded mid scratch
    temps = th * W * (9 * Cmid + Cout) * f32                   # im2col + conv temporaries
    weights = 2 * ((Cin * Cmid + 9 * Cmid * Cout) * mm_itemsize
                   + (2 * Cin + 3 * Cmid + Cout) * f32)
    return x_tiles + out_tile + mid + temps + weights


def _choose_row_tile(H, W, Cin, Cmid, Cout, mm_itemsize, budget=8 * 1024 * 1024):
    best = 1
    for th in range(1, H + 1):
        if H % th == 0 and _vmem_estimate_bytes(th, W, Cin, Cmid, Cout, mm_itemsize) <= budget:
            best = th
    return best


# ----------------------------------------------------------------------------
# dense_block forward (NCHW in, NCHW out, like the PyTorch module)
# ----------------------------------------------------------------------------
def dense_block_forward(x_nchw, params, *, matmul_dtype=jnp.bfloat16, row_tile=None):
    x = jnp.transpose(x_nchw, (0, 2, 3, 1)).astype(jnp.float32)       # NHWC
    N, H, W, Cin = x.shape
    Cmid = params['w1'].shape[1]
    Cout = params['w2'].shape[-1]

    # Fold eval-mode BN into per-channel scale/bias.
    s1 = params['bn1_gamma'] / jnp.sqrt(params['bn1_var'] + EPS)
    b1 = params['bn1_beta'] - params['bn1_mean'] * s1
    s2 = params['bn2_gamma'] / jnp.sqrt(params['bn2_var'] + EPS)
    b2 = params['bn2_beta'] - params['bn2_mean'] * s2

    mm_dtype = jnp.dtype(matmul_dtype)
    w1 = params['w1'].astype(mm_dtype)                                 # (Cin, Cmid)
    w2 = params['w2'].reshape(9 * Cmid, Cout).astype(mm_dtype)         # im2col layout

    TH = row_tile if row_tile is not None else _choose_row_tile(
        H, W, Cin, Cmid, Cout, mm_dtype.itemsize)
    assert H % TH == 0, f"row_tile={TH} must divide H={H}"
    HT = H // TH

    x_top_spec = pl.BlockSpec(
        (1, 1, W, Cin), lambda n, i: (n, jnp.maximum(i * TH - 1, 0), 0, 0))
    x_ctr_spec = pl.BlockSpec((1, TH, W, Cin), lambda n, i: (n, i, 0, 0))
    x_bot_spec = pl.BlockSpec(
        (1, 1, W, Cin), lambda n, i: (n, jnp.minimum((i + 1) * TH, H - 1), 0, 0))

    def const2d(shape):
        # Constant index_map -> weights / BN params stay resident across steps.
        return pl.BlockSpec(shape, lambda n, i: (0, 0))

    out_nhwc = pl.pallas_call(
        _fused_dense_block_kernel,
        out_shape=jax.ShapeDtypeStruct((N, H, W, Cin + Cout), jnp.float32),
        grid=(N, HT),
        in_specs=[
            x_top_spec, x_ctr_spec, x_bot_spec,
            const2d((1, Cin)), const2d((1, Cin)),
            const2d((Cin, Cmid)), const2d((1, Cmid)),
            const2d((1, Cmid)), const2d((1, Cmid)),
            const2d((9 * Cmid, Cout)), const2d((1, Cout)),
        ],
        out_specs=pl.BlockSpec((1, TH, W, Cin + Cout), lambda n, i: (n, i, 0, 0)),
        scratch_shapes=[pltpu.VMEM((TH + 2, W + 2, Cmid), jnp.float32)],
        compiler_params=pltpu.CompilerParams(
            dimension_semantics=("parallel", "parallel"),
            vmem_limit_bytes=32 * 1024 * 1024),
    )(x, x, x,
      s1[None, :], b1[None, :], w1, params['cb1'][None, :],
      s2[None, :], b2[None, :], w2, params['cb2'][None, :])

    return jnp.transpose(out_nhwc, (0, 3, 1, 2))                        # back to NCHW


# ----------------------------------------------------------------------------
# Pure-JAX reference (correctness check only)
# ----------------------------------------------------------------------------
def _reference(x_nchw, params):
    x = jnp.transpose(x_nchw, (0, 2, 3, 1))
    s1 = params['bn1_gamma'] / jnp.sqrt(params['bn1_var'] + EPS)
    b1 = params['bn1_beta'] - params['bn1_mean'] * s1
    s2 = params['bn2_gamma'] / jnp.sqrt(params['bn2_var'] + EPS)
    b2 = params['bn2_beta'] - params['bn2_mean'] * s2
    h = jnp.maximum(x * s1 + b1, 0.0)
    y = lax.conv_general_dilated(h, params['w1'][None, None], (1, 1), 'VALID',
                                 dimension_numbers=('NHWC', 'HWIO', 'NHWC')) + params['cb1']
    y = jnp.maximum(y * s2 + b2, 0.0)
    z = lax.conv_general_dilated(y, params['w2'], (1, 1), 'SAME',
                                 dimension_numbers=('NHWC', 'HWIO', 'NHWC')) + params['cb2']
    out = jnp.concatenate([x, z], axis=-1)
    return jnp.transpose(out, (0, 3, 1, 2))


if __name__ == "__main__":
    N, Cin, H, W = 2, 4, 16, 16
    Cmid = 8          # inter_Channels
    Cout = 32         # conv2 always produces 32 channels (growth rate)

    key = jax.random.PRNGKey(0)
    ks = jax.random.split(key, 13)

    x = jax.random.normal(ks[0], (N, Cin, H, W), jnp.float32)

    params = dict(
        bn1_gamma=jax.random.uniform(ks[1], (Cin,), minval=0.5, maxval=1.5),
        bn1_beta=0.1 * jax.random.normal(ks[2], (Cin,)),
        bn1_mean=0.1 * jax.random.normal(ks[3], (Cin,)),
        bn1_var=jax.random.uniform(ks[4], (Cin,), minval=0.5, maxval=1.5),
        w1=0.1 * jax.random.normal(ks[5], (Cin, Cmid)),
        cb1=0.1 * jax.random.normal(ks[6], (Cmid,)),
        bn2_gamma=jax.random.uniform(ks[7], (Cmid,), minval=0.5, maxval=1.5),
        bn2_beta=0.1 * jax.random.normal(ks[8], (Cmid,)),
        bn2_mean=0.1 * jax.random.normal(ks[9], (Cmid,)),
        bn2_var=jax.random.uniform(ks[10], (Cmid,), minval=0.5, maxval=1.5),
        w2=0.1 * jax.random.normal(ks[11], (3, 3, Cmid, Cout)),
        cb2=0.1 * jax.random.normal(ks[12], (Cout,)),
    )

    ref = _reference(x, params)

    # Exact (f32) path with explicit row tiling (exercises the halo logic).
    out_f32 = jax.block_until_ready(
        dense_block_forward(x, params, matmul_dtype=jnp.float32, row_tile=8))
    assert out_f32.shape == (N, Cin + Cout, H, W), out_f32.shape
    err_f32 = float(jnp.max(jnp.abs(out_f32 - ref)))
    assert err_f32 < 1e-4, err_f32

    # Exact (f32) path with auto-chosen tile (single row-tile per image).
    out_auto = jax.block_until_ready(
        dense_block_forward(x, params, matmul_dtype=jnp.float32))
    err_auto = float(jnp.max(jnp.abs(out_auto - ref)))
    assert err_auto < 1e-4, err_auto

    # bf16-MXU path (f32 accumulation / f32 VPU epilogue) — looser tolerance.
    out_bf16 = jax.block_until_ready(
        dense_block_forward(x, params, matmul_dtype=jnp.bfloat16, row_tile=8))
    err_bf16 = float(jnp.max(jnp.abs(out_bf16 - ref)))
    assert err_bf16 < 3e-2, err_bf16

    print("KERNEL_OK")
</pallas_src>

<mosaic_0001>
module attributes {stable_mosaic.version = 11 : i64} {
  func.func @_fused_dense_block_kernel(%arg0: i32, %arg1: i32, %arg2: memref<1x1x16x4xf32, #tpu.memory_space<vmem>>, %arg3: memref<1x8x16x4xf32, #tpu.memory_space<vmem>>, %arg4: memref<1x1x16x4xf32, #tpu.memory_space<vmem>>, %arg5: memref<1x4xf32, #tpu.memory_space<vmem>>, %arg6: memref<1x4xf32, #tpu.memory_space<vmem>>, %arg7: memref<4x8xf32, #tpu.memory_space<vmem>>, %arg8: memref<1x8xf32, #tpu.memory_space<vmem>>, %arg9: memref<1x8xf32, #tpu.memory_space<vmem>>, %arg10: memref<1x8xf32, #tpu.memory_space<vmem>>, %arg11: memref<72x32xf32, #tpu.memory_space<vmem>>, %arg12: memref<1x32xf32, #tpu.memory_space<vmem>>, %arg13: memref<1x8x16x36xf32, #tpu.memory_space<vmem>>, %arg14: memref<10x18x8xf32, #tpu.memory_space<vmem>>) attributes {dimension_semantics = [#tpu.dimension_semantics<parallel>, #tpu.dimension_semantics<parallel>], iteration_bounds = array<i64: 2, 2>, scalar_prefetch = 0 : i64, scratch_operands = 1 : i64, tpu.core_type = #tpu.core_type<tc>, window_params = [{transform_indices = @transform_0, window_bounds = array<i64: 1, 1, 16, 4>}, {transform_indices = @transform_1, window_bounds = array<i64: 1, 8, 16, 4>}, {transform_indices = @transform_2, window_bounds = array<i64: 1, 1, 16, 4>}, {pipeline_mode = #tpu.pipeline_mode<synchronous>, transform_indices = @transform_3, window_bounds = array<i64: 1, 4>}, {pipeline_mode = #tpu.pipeline_mode<synchronous>, transform_indices = @transform_4, window_bounds = array<i64: 1, 4>}, {pipeline_mode = #tpu.pipeline_mode<synchronous>, transform_indices = @transform_5, window_bounds = array<i64: 4, 8>}, {pipeline_mode = #tpu.pipeline_mode<synchronous>, transform_indices = @transform_6, window_bounds = array<i64: 1, 8>}, {pipeline_mode = #tpu.pipeline_mode<synchronous>, transform_indices = @transform_7, window_bounds = array<i64: 1, 8>}, {pipeline_mode = #tpu.pipeline_mode<synchronous>, transform_indices = @transform_8, window_bounds = array<i64: 1, 8>}, {pipeline_mode = #tpu.pipeline_mode<synchronous>, transform_indices = @transform_9, window_bounds = array<i64: 72, 32>}, {pipeline_mode = #tpu.pipeline_mode<synchronous>, transform_indices = @transform_10, window_bounds = array<i64: 1, 32>}, {transform_indices = @transform_11, window_bounds = array<i64: 1, 8, 16, 36>}]} {
    %cst = arith.constant 0.000000e+00 : f32
    %0 = vector.broadcast %cst : f32 to vector<10x18x8xf32>
    %c0 = arith.constant 0 : index
    %c0_0 = arith.constant 0 : index
    %c0_1 = arith.constant 0 : index
    %1 = vector.load %arg14[%c0, %c0_0, %c0_1] : memref<10x18x8xf32, #tpu.memory_space<vmem>>, vector<10x18x8xf32>
    tpu.vector_store %arg14[%c0, %c0_0, %c0_1], %0 {strides = array<i32>} : memref<10x18x8xf32, #tpu.memory_space<vmem>>, vector<10x18x8xf32>,
    %c0_2 = arith.constant 0 : index
    %c0_3 = arith.constant 0 : index
    %c0_4 = arith.constant 0 : index
    %c0_5 = arith.constant 0 : index
    %2 = vector.load %arg3[%c0_2, %c0_3, %c0_4, %c0_5] : memref<1x8x16x4xf32, #tpu.memory_space<vmem>>, vector<1x8x16x4xf32>
    %3 = vector.shape_cast %2 : vector<1x8x16x4xf32> to vector<8x16x4xf32>
    %4 = vector.shape_cast %3 : vector<8x16x4xf32> to vector<128x4xf32>
    %c0_6 = arith.constant 0 : index
    %c0_7 = arith.constant 0 : index
    %5 = vector.load %arg5[%c0_6, %c0_7] : memref<1x4xf32, #tpu.memory_space<vmem>>, vector<1x4xf32>
    %6 = vector.broadcast %5 : vector<1x4xf32> to vector<128x4xf32>
    %7 = arith.mulf %4, %6 : vector<128x4xf32>
    %c0_8 = arith.constant 0 : index
    %c0_9 = arith.constant 0 : index
    %8 = vector.load %arg6[%c0_8, %c0_9] : memref<1x4xf32, #tpu.memory_space<vmem>>, vector<1x4xf32>
    %9 = vector.broadcast %8 : vector<1x4xf32> to vector<128x4xf32>
    %10 = arith.addf %7, %9 : vector<128x4xf32>
    %cst_10 = arith.constant 0.000000e+00 : f32
    %11 = vector.broadcast %cst_10 : f32 to vector<128x4xf32>
    %12 = arith.maximumf %10, %11 : vector<128x4xf32>
    %c0_11 = arith.constant 0 : index
    %c0_12 = arith.constant 0 : index
    %13 = vector.load %arg7[%c0_11, %c0_12] : memref<4x8xf32, #tpu.memory_space<vmem>>, vector<4x8xf32>
    %cst_13 = arith.constant dense<0.000000e+00> : vector<128x8xf32>
    %14 = tpu.matmul %12, %13, %cst_13 {dimension_numbers = #tpu.dot_dimension_numbers<[1], [0], [0], [1], [0, 0, 1, 1], [], []>} : vector<128x4xf32>, vector<4x8xf32>, vector<128x8xf32> -> vector<128x8xf32>
    %c0_14 = arith.constant 0 : index
    %c0_15 = arith.constant 0 : index
    %15 = vector.load %arg8[%c0_14, %c0_15] : memref<1x8xf32, #tpu.memory_space<vmem>>, vector<1x8xf32>
    %16 = vector.broadcast %15 : vector<1x8xf32> to vector<128x8xf32>
    %17 = arith.addf %14, %16 : vector<128x8xf32>
    %c0_16 = arith.constant 0 : index
    %c0_17 = arith.constant 0 : index
    %18 = vector.load %arg9[%c0_16, %c0_17] : memref<1x8xf32, #tpu.memory_space<vmem>>, vector<1x8xf32>
    %19 = vector.broadcast %18 : vector<1x8xf32> to vector<128x8xf32>
    %20 = arith.mulf %17, %19 : vector<128x8xf32>
    %c0_18 = arith.constant 0 : index
    %c0_19 = arith.constant 0 : index
    %21 = vector.load %arg10[%c0_18, %c0_19] : memref<1x8xf32, #tpu.memory_space<vmem>>, vector<1x8xf32>
    %22 = vector.broadcast %21 : vector<1x8xf32> to vector<128x8xf32>
    %23 = arith.addf %20, %22 : vector<128x8xf32>
    %cst_20 = arith.constant 0.000000e+00 : f32
    %24 = vector.broadcast %cst_20 : f32 to vector<128x8xf32>
    %25 = arith.maximumf %23, %24 : vector<128x8xf32>
    %26 = vector.shape_cast %25 : vector<128x8xf32> to vector<8x16x8xf32>
    %c1 = arith.constant 1 : index
    %c1_21 = arith.constant 1 : index
    %c0_22 = arith.constant 0 : index
    %27 = vector.load %arg14[%c1, %c1_21, %c0_22] : memref<10x18x8xf32, #tpu.memory_space<vmem>>, vector<8x16x8xf32>
    tpu.vector_store %arg14[%c1, %c1_21, %c0_22], %26 {strides = array<i32>} : memref<10x18x8xf32, #tpu.memory_space<vmem>>, vector<8x16x8xf32>,
    %c0_23 = arith.constant 0 : index
    %c0_24 = arith.constant 0 : index
    %c0_25 = arith.constant 0 : index
    %c0_26 = arith.constant 0 : index
    %28 = vector.load %arg2[%c0_23, %c0_24, %c0_25, %c0_26] : memref<1x1x16x4xf32, #tpu.memory_space<vmem>>, vector<1x1x16x4xf32>
    %29 = vector.shape_cast %28 : vector<1x1x16x4xf32> to vector<1x16x4xf32>
    %30 = vector.shape_cast %29 : vector<1x16x4xf32> to vector<16x4xf32>
    %c0_27 = arith.constant 0 : index
    %c0_28 = arith.constant 0 : index
    %31 = vector.load %arg5[%c0_27, %c0_28] : memref<1x4xf32, #tpu.memory_space<vmem>>, vector<1x4xf32>
    %32 = vector.broadcast %31 : vector<1x4xf32> to vector<16x4xf32>
    %33 = arith.mulf %30, %32 : vector<16x4xf32>
    %c0_29 = arith.constant 0 : index
    %c0_30 = arith.constant 0 : index
    %34 = vector.load %arg6[%c0_29, %c0_30] : memref<1x4xf32, #tpu.memory_space<vmem>>, vector<1x4xf32>
    %35 = vector.broadcast %34 : vector<1x4xf32> to vector<16x4xf32>
    %36 = arith.addf %33, %35 : vector<16x4xf32>
    %cst_31 = arith.constant 0.000000e+00 : f32
    %37 = vector.broadcast %cst_31 : f32 to vector<16x4xf32>
    %38 = arith.maximumf %36, %37 : vector<16x4xf32>
    %c0_32 = arith.constant 0 : index
    %c0_33 = arith.constant 0 : index
    %39 = vector.load %arg7[%c0_32, %c0_33] : memref<4x8xf32, #tpu.memory_space<vmem>>, vector<4x8xf32>
    %cst_34 = arith.constant dense<0.000000e+00> : vector<16x8xf32>
    %40 = tpu.matmul %38, %39, %cst_34 {dimension_numbers = #tpu.dot_dimension_numbers<[1], [0], [0], [1], [0, 0, 1, 1], [], []>} : vector<16x4xf32>, vector<4x8xf32>, vector<16x8xf32> -> vector<16x8xf32>
    %c0_35 = arith.constant 0 : index
    %c0_36 = arith.constant 0 : index
    %41 = vector.load %arg8[%c0_35, %c0_36] : memref<1x8xf32, #tpu.memory_space<vmem>>, vector<1x8xf32>
    %42 = vector.broadcast %41 : vector<1x8xf32> to vector<16x8xf32>
    %43 = arith.addf %40, %42 : vector<16x8xf32>
    %c0_37 = arith.constant 0 : index
    %c0_38 = arith.constant 0 : index
    %44 = vector.load %arg9[%c0_37, %c0_38] : memref<1x8xf32, #tpu.memory_space<vmem>>, vector<1x8xf32>
    %45 = vector.broadcast %44 : vector<1x8xf32> to vector<16x8xf32>
    %46 = arith.mulf %43, %45 : vector<16x8xf32>
    %c0_39 = arith.constant 0 : index
    %c0_40 = arith.constant 0 : index
    %47 = vector.load %arg10[%c0_39, %c0_40] : memref<1x8xf32, #tpu.memory_space<vmem>>, vector<1x8xf32>
    %48 = vector.broadcast %47 : vector<1x8xf32> to vector<16x8xf32>
    %49 = arith.addf %46, %48 : vector<16x8xf32>
    %cst_41 = arith.constant 0.000000e+00 : f32
    %50 = vector.broadcast %cst_41 : f32 to vector<16x8xf32>
    %51 = arith.maximumf %49, %50 : vector<16x8xf32>
    %52 = vector.shape_cast %51 : vector<16x8xf32> to vector<1x16x8xf32>
    %c0_42 = arith.constant 0 : index
    %c0_43 = arith.constant 0 : index
    %c0_44 = arith.constant 0 : index
    %c0_45 = arith.constant 0 : index
    %53 = vector.load %arg4[%c0_42, %c0_43, %c0_44, %c0_45] : memref<1x1x16x4xf32, #tpu.memory_space<vmem>>, vector<1x1x16x4xf32>
    %54 = vector.shape_cast %53 : vector<1x1x16x4xf32> to vector<1x16x4xf32>
    %55 = vector.shape_cast %54 : vector<1x16x4xf32> to vector<16x4xf32>
    %c0_46 = arith.constant 0 : index
    %c0_47 = arith.constant 0 : index
    %56 = vector.load %arg5[%c0_46, %c0_47] : memref<1x4xf32, #tpu.memory_space<vmem>>, vector<1x4xf32>
    %57 = vector.broadcast %56 : vector<1x4xf32> to vector<16x4xf32>
    %58 = arith.mulf %55, %57 : vector<16x4xf32>
    %c0_48 = arith.constant 0 : index
    %c0_49 = arith.constant 0 : index
    %59 = vector.load %arg6[%c0_48, %c0_49] : memref<1x4xf32, #tpu.memory_space<vmem>>, vector<1x4xf32>
    %60 = vector.broadcast %59 : vector<1x4xf32> to vector<16x4xf32>
    %61 = arith.addf %58, %60 : vector<16x4xf32>
    %cst_50 = arith.constant 0.000000e+00 : f32
    %62 = vector.broadcast %cst_50 : f32 to vector<16x4xf32>
    %63 = arith.maximumf %61, %62 : vector<16x4xf32>
    %c0_51 = arith.constant 0 : index
    %c0_52 = arith.constant 0 : index
    %64 = vector.load %arg7[%c0_51, %c0_52] : memref<4x8xf32, #tpu.memory_space<vmem>>, vector<4x8xf32>
    %cst_53 = arith.constant dense<0.000000e+00> : vector<16x8xf32>
    %65 = tpu.matmul %63, %64, %cst_53 {dimension_numbers = #tpu.dot_dimension_numbers<[1], [0], [0], [1], [0, 0, 1, 1], [], []>} : vector<16x4xf32>, vector<4x8xf32>, vector<16x8xf32> -> vector<16x8xf32>
    %c0_54 = arith.constant 0 : index
    %c0_55 = arith.constant 0 : index
    %66 = vector.load %arg8[%c0_54, %c0_55] : memref<1x8xf32, #tpu.memory_space<vmem>>, vector<1x8xf32>
    %67 = vector.broadcast %66 : vector<1x8xf32> to vector<16x8xf32>
    %68 = arith.addf %65, %67 : vector<16x8xf32>
    %c0_56 = arith.constant 0 : index
    %c0_57 = arith.constant 0 : index
    %69 = vector.load %arg9[%c0_56, %c0_57] : memref<1x8xf32, #tpu.memory_space<vmem>>, vector<1x8xf32>
    %70 = vector.broadcast %69 : vector<1x8xf32> to vector<16x8xf32>
    %71 = arith.mulf %68, %70 : vector<16x8xf32>
    %c0_58 = arith.constant 0 : index
    %c0_59 = arith.constant 0 : index
    %72 = vector.load %arg10[%c0_58, %c0_59] : memref<1x8xf32, #tpu.memory_space<vmem>>, vector<1x8xf32>
    %73 = vector.broadcast %72 : vector<1x8xf32> to vector<16x8xf32>
    %74 = arith.addf %71, %73 : vector<16x8xf32>
    %cst_60 = arith.constant 0.000000e+00 : f32
    %75 = vector.broadcast %cst_60 : f32 to vector<16x8xf32>
    %76 = arith.maximumf %74, %75 : vector<16x8xf32>
    %77 = vector.shape_cast %76 : vector<16x8xf32> to vector<1x16x8xf32>
    %c0_i32 = arith.constant 0 : i32
    %78 = arith.cmpi sgt, %arg1, %c0_i32 : i32
    %79 = arith.extui %78 : i1 to i32
    %c0_i32_61 = arith.constant 0 : i32
    %80 = arith.cmpi ne, %79, %c0_i32_61 : i32
    scf.if %80 {
      %c0_102 = arith.constant 0 : index
      %c1_103 = arith.constant 1 : index
      %c0_104 = arith.constant 0 : index
      %115 = vector.load %arg14[%c0_102, %c1_103, %c0_104] : memref<10x18x8xf32, #tpu.memory_space<vmem>>, vector<1x16x8xf32>
      tpu.vector_store %arg14[%c0_102, %c1_103, %c0_104], %52 {strides = array<i32>} : memref<10x18x8xf32, #tpu.memory_space<vmem>>, vector<1x16x8xf32>,
    } else {
    }
    %c1_i32 = arith.constant 1 : i32
    %81 = arith.cmpi slt, %arg1, %c1_i32 : i32
    %82 = arith.extui %81 : i1 to i32
    %c0_i32_62 = arith.constant 0 : i32
    %83 = arith.cmpi ne, %82, %c0_i32_62 : i32
    scf.if %83 {
      %c9 = arith.constant 9 : index
      %c1_102 = arith.constant 1 : index
      %c0_103 = arith.constant 0 : index
      %115 = vector.load %arg14[%c9, %c1_102, %c0_103] : memref<10x18x8xf32, #tpu.memory_space<vmem>>, vector<1x16x8xf32>
      tpu.vector_store %arg14[%c9, %c1_102, %c0_103], %77 {strides = array<i32>} : memref<10x18x8xf32, #tpu.memory_space<vmem>>, vector<1x16x8xf32>,
    } else {
    }
    %c0_63 = arith.constant 0 : index
    %c0_64 = arith.constant 0 : index
    %c0_65 = arith.constant 0 : index
    %84 = vector.load %arg14[%c0_63, %c0_64, %c0_65] : memref<10x18x8xf32, #tpu.memory_space<vmem>>, vector<8x16x8xf32>
    %85 = vector.shape_cast %84 : vector<8x16x8xf32> to vector<128x8xf32>
    %c0_66 = arith.constant 0 : index
    %c1_67 = arith.constant 1 : index
    %c0_68 = arith.constant 0 : index
    %86 = vector.load %arg14[%c0_66, %c1_67, %c0_68] : memref<10x18x8xf32, #tpu.memory_space<vmem>>, vector<8x16x8xf32>
    %87 = vector.shape_cast %86 : vector<8x16x8xf32> to vector<128x8xf32>
    %c0_69 = arith.constant 0 : index
    %c2 = arith.constant 2 : index
    %c0_70 = arith.constant 0 : index
    %88 = vector.load %arg14[%c0_69, %c2, %c0_70] : memref<10x18x8xf32, #tpu.memory_space<vmem>>, vector<8x16x8xf32>
    %89 = vector.shape_cast %88 : vector<8x16x8xf32> to vector<128x8xf32>
    %c1_71 = arith.constant 1 : index
    %c0_72 = arith.constant 0 : index
    %c0_73 = arith.constant 0 : index
    %90 = vector.load %arg14[%c1_71, %c0_72, %c0_73] : memref<10x18x8xf32, #tpu.memory_space<vmem>>, vector<8x16x8xf32>
    %91 = vector.shape_cast %90 : vector<8x16x8xf32> to vector<128x8xf32>
    %c1_74 = arith.constant 1 : index
    %c1_75 = arith.constant 1 : index
    %c0_76 = arith.constant 0 : index
    %92 = vector.load %arg14[%c1_74, %c1_75, %c0_76] : memref<10x18x8xf32, #tpu.memory_space<vmem>>, vector<8x16x8xf32>
    %93 = vector.shape_cast %92 : vector<8x16x8xf32> to vector<128x8xf32>
    %c1_77 = arith.constant 1 : index
    %c2_78 = arith.constant 2 : index
    %c0_79 = arith.constant 0 : index
    %94 = vector.load %arg14[%c1_77, %c2_78, %c0_79] : memref<10x18x8xf32, #tpu.memory_space<vmem>>, vector<8x16x8xf32>
    %95 = vector.shape_cast %94 : vector<8x16x8xf32> to vector<128x8xf32>
    %c2_80 = arith.constant 2 : index
    %c0_81 = arith.constant 0 : index
    %c0_82 = arith.constant 0 : index
    %96 = vector.load %arg14[%c2_80, %c0_81, %c0_82] : memref<10x18x8xf32, #tpu.memory_space<vmem>>, vector<8x16x8xf32>
    %97 = vector.shape_cast %96 : vector<8x16x8xf32> to vector<128x8xf32>
    %c2_83 = arith.constant 2 : index
    %c1_84 = arith.constant 1 : index
    %c0_85 = arith.constant 0 : index
    %98 = vector.load %arg14[%c2_83, %c1_84, %c0_85] : memref<10x18x8xf32, #tpu.memory_space<vmem>>, vector<8x16x8xf32>
    %99 = vector.shape_cast %98 : vector<8x16x8xf32> to vector<128x8xf32>
    %c2_86 = arith.constant 2 : index
    %c2_87 = arith.constant 2 : index
    %c0_88 = arith.constant 0 : index
    %100 = vector.load %arg14[%c2_86, %c2_87, %c0_88] : memref<10x18x8xf32, #tpu.memory_space<vmem>>, vector<8x16x8xf32>
    %101 = vector.shape_cast %100 : vector<8x16x8xf32> to vector<128x8xf32>
    %102 = tpu.concatenate %85, %87, %89, %91, %93, %95, %97, %99, %101 in 1 : vector<128x8xf32>, vector<128x8xf32>, vector<128x8xf32>, vector<128x8xf32>, vector<128x8xf32>, vector<128x8xf32>, vector<128x8xf32>, vector<128x8xf32>, vector<128x8xf32> -> vector<128x72xf32>
    %c0_89 = arith.constant 0 : index
    %c0_90 = arith.constant 0 : index
    %103 = vector.load %arg11[%c0_89, %c0_90] : memref<72x32xf32, #tpu.memory_space<vmem>>, vector<72x32xf32>
    %cst_91 = arith.constant dense<0.000000e+00> : vector<128x32xf32>
    %104 = tpu.matmul %102, %103, %cst_91 {dimension_numbers = #tpu.dot_dimension_numbers<[1], [0], [0], [1], [0, 0, 1, 1], [], []>} : vector<128x72xf32>, vector<72x32xf32>, vector<128x32xf32> -> vector<128x32xf32>
    %c0_92 = arith.constant 0 : index
    %c0_93 = arith.constant 0 : index
    %105 = vector.load %arg12[%c0_92, %c0_93] : memref<1x32xf32, #tpu.memory_space<vmem>>, vector<1x32xf32>
    %106 = vector.broadcast %105 : vector<1x32xf32> to vector<128x32xf32>
    %107 = arith.addf %104, %106 : vector<128x32xf32>
    %c0_94 = arith.constant 0 : index
    %c0_95 = arith.constant 0 : index
    %c0_96 = arith.constant 0 : index
    %c0_97 = arith.constant 0 : index
    %108 = vector.load %arg3[%c0_94, %c0_95, %c0_96, %c0_97] : memref<1x8x16x4xf32, #tpu.memory_space<vmem>>, vector<1x8x16x4xf32>
    %109 = vector.shape_cast %108 : vector<1x8x16x4xf32> to vector<8x16x4xf32>
    %110 = vector.shape_cast %107 : vector<128x32xf32> to vector<8x16x32xf32>
    %111 = tpu.concatenate %109, %110 in 2 : vector<8x16x4xf32>, vector<8x16x32xf32> -> vector<8x16x36xf32>
    %c0_98 = arith.constant 0 : index
    %c0_99 = arith.constant 0 : index
    %c0_100 = arith.constant 0 : index
    %c0_101 = arith.constant 0 : index
    %112 = vector.load %arg13[%c0_98, %c0_99, %c0_100, %c0_101] : memref<1x8x16x36xf32, #tpu.memory_space<vmem>>, vector<1x8x16x36xf32>
    %113 = vector.shape_cast %112 : vector<1x8x16x36xf32> to vector<8x16x36xf32>
    %114 = vector.shape_cast %111 : vector<8x16x36xf32> to vector<1x8x16x36xf32>
    tpu.vector_store %arg13[%c0_98, %c0_99, %c0_100, %c0_101], %114 {strides = array<i32>} : memref<1x8x16x36xf32, #tpu.memory_space<vmem>>, vector<1x8x16x36xf32>,
    return
  }
  func.func @transform_0(%arg0: i32, %arg1: i32) -> (i32, i32, i32, i32) {
    %c8_i32 = arith.constant 8 : i32
    %0 = arith.muli %arg1, %c8_i32 : i32
    %c1_i32 = arith.constant 1 : i32
    %1 = arith.subi %0, %c1_i32 : i32
    %c0_i32 = arith.constant 0 : i32
    %2 = arith.maxsi %1, %c0_i32 : i32
    %c0_i32_0 = arith.constant 0 : i32
    %c0_i32_1 = arith.constant 0 : i32
    %c0_i32_2 = arith.constant 0 : i32
    return %arg0, %2, %c0_i32_0, %c0_i32_1 : i32, i32, i32, i32
  }
  func.func @transform_1(%arg0: i32, %arg1: i32) -> (i32, i32, i32, i32) {
    %c0_i32 = arith.constant 0 : i32
    %c0_i32_0 = arith.constant 0 : i32
    %c0_i32_1 = arith.constant 0 : i32
    return %arg0, %arg1, %c0_i32, %c0_i32_0 : i32, i32, i32, i32
  }
  func.func @transform_2(%arg0: i32, %arg1: i32) -> (i32, i32, i32, i32) {
    %c1_i32 = arith.constant 1 : i32
    %0 = arith.addi %arg1, %c1_i32 : i32
    %c8_i32 = arith.constant 8 : i32
    %1 = arith.muli %0, %c8_i32 : i32
    %c15_i32 = arith.constant 15 : i32
    %2 = arith.minsi %1, %c15_i32 : i32
    %c0_i32 = arith.constant 0 : i32
    %c0_i32_0 = arith.constant 0 : i32
    %c0_i32_1 = arith.constant 0 : i32
    return %arg0, %2, %c0_i32, %c0_i32_0 : i32, i32, i32, i32
  }
  func.func @transform_3(%arg0: i32, %arg1: i32) -> (i32, i32) {
    %c0_i32 = arith.constant 0 : i32
    %c0_i32_0 = arith.constant 0 : i32
    %c0_i32_1 = arith.constant 0 : i32
    return %c0_i32, %c0_i32_0 : i32, i32
  }
  func.func @transform_4(%arg0: i32, %arg1: i32) -> (i32, i32) {
    %c0_i32 = arith.constant 0 : i32
    %c0_i32_0 = arith.constant 0 : i32
    %c0_i32_1 = arith.constant 0 : i32
    return %c0_i32, %c0_i32_0 : i32, i32
  }
  func.func @transform_5(%arg0: i32, %arg1: i32) -> (i32, i32) {
    %c0_i32 = arith.constant 0 : i32
    %c0_i32_0 = arith.constant 0 : i32
    %c0_i32_1 = arith.constant 0 : i32
    return %c0_i32, %c0_i32_0 : i32, i32
  }
  func.func @transform_6(%arg0: i32, %arg1: i32) -> (i32, i32) {
    %c0_i32 = arith.constant 0 : i32
    %c0_i32_0 = arith.constant 0 : i32
    %c0_i32_1 = arith.constant 0 : i32
    return %c0_i32, %c0_i32_0 : i32, i32
  }
  func.func @transform_7(%arg0: i32, %arg1: i32) -> (i32, i32) {
    %c0_i32 = arith.constant 0 : i32
    %c0_i32_0 = arith.constant 0 : i32
    %c0_i32_1 = arith.constant 0 : i32
    return %c0_i32, %c0_i32_0 : i32, i32
  }
  func.func @transform_8(%arg0: i32, %arg1: i32) -> (i32, i32) {
    %c0_i32 = arith.constant 0 : i32
    %c0_i32_0 = arith.constant 0 : i32
    %c0_i32_1 = arith.constant 0 : i32
    return %c0_i32, %c0_i32_0 : i32, i32
  }
  func.func @transform_9(%arg0: i32, %arg1: i32) -> (i32, i32) {
    %c0_i32 = arith.constant 0 : i32
    %c0_i32_0 = arith.constant 0 : i32
    %c0_i32_1 = arith.constant 0 : i32
    return %c0_i32, %c0_i32_0 : i32, i32
  }
  func.func @transform_10(%arg0: i32, %arg1: i32) -> (i32, i32) {
    %c0_i32 = arith.constant 0 : i32
    %c0_i32_0 = arith.constant 0 : i32
    %c0_i32_1 = arith.constant 0 : i32
    return %c0_i32, %c0_i32_0 : i32, i32
  }
  func.func @transform_11(%arg0: i32, %arg1: i32) -> (i32, i32, i32, i32) {
    %c0_i32 = arith.constant 0 : i32
    %c0_i32_0 = arith.constant 0 : i32
    %c0_i32_1 = arith.constant 0 : i32
    return %arg0, %arg1, %c0_i32, %c0_i32_0 : i32, i32, i32, i32
  }
}

</mosaic_0001>

<bundles_post_ra>
// kernel: tpu_custom_call.1
= control target key start
LH: loop header
LB: loop body
LE: loop exit
PB: predicated region body
PF: predicated region fallthrough
CT: control target
= control target key end

     0   :  { %s3941_s0 = inlined_call_operand.vmem [shape: f32[2,16,16,4], index: 0, kind: input, shape index: {}]   ;;  %s3942_s1 = inlined_call_operand.vmem [shape: f32[2,16,16,4], index: 1, kind: input, shape index: {}]   ;;  %s3943_s2 = inlined_call_operand.vmem [shape: f32[2,16,16,4], index: 2, kind: input, shape index: {}]   ;;  %s3944_s3 = inlined_call_operand.vmem [shape: f32[1,4], index: 3, kind: input, shape index: {}]   ;;  %s3945_s4 = inlined_call_operand.vmem [shape: f32[1,4], index: 4, kind: input, shape index: {}]   ;;  %s3946_s5 = inlined_call_operand.vmem [shape: f32[4,8], index: 5, kind: input, shape index: {}]   ;;  %s3947_s6 = inlined_call_operand.vmem [shape: f32[1,8], index: 6, kind: input, shape index: {}]   ;;  %s3948_s7 = inlined_call_operand.vmem [shape: f32[1,8], index: 7, kind: input, shape index: {}]   ;;  %s3949_s8 = inlined_call_operand.vmem [shape: f32[1,8], index: 8, kind: input, shape index: {}]   ;;  %s3950_s9 = inlined_call_operand.vmem [shape: f32[72,32], index: 9, kind: input, shape index: {}]   ;;  %s3951_s10 = inlined_call_operand.vmem [shape: f32[1,32], index: 10, kind: input, shape index: {}]   ;;  %s3952_s11 = inlined_call_operand.hbm [shape: f32[2,16,16,36], index: 11, kind: output, shape index: {}]  }
   0x1   :  { %3963 = sst [smem:[#allocation15_spill]] %s3946_s5 }
   0x2   :  { %16 = vsyncpa [#allocation4], 0 }
   0x3   :  { %18 = vsyncpa [#allocation4 + $0x1], 0  ;;  %s2942_s17 = smov 0   ;;  %s2944_s18 = smov 0  }
   0x4   :  { %s2946_s19 = smov 0   ;;  %s2948_s20 = smov 0  }
   0x5   :  { %s2950_s21 = smov 0   ;;  %s2952_s22 = smov 0  }
   0x6   :  { %s2954_s23 = smov 0   ;;  %s2956_s24 = smov 0  }
   0x7 LB: > { %3964 = sst [smem:[#allocation6_spill]] %s2840_s17  ;;  %s2439_s25 = sadd.s32 4294967295, %s2868_s24   ;;  %s2868_s24 = sphi %s2956_s24, %s24_s24   ;;  %s2864_s23 = sphi %s2954_s23, %s3986_s23   ;;  %s2860_s22 = sphi %s2952_s22, %s3985_s22   ;;  %s2856_s21 = sphi %s2950_s21, %s3984_s21   ;;  %s2852_s20 = sphi %s2948_s20, %s3983_s20   ;;  %s2848_s19 = sphi %s2946_s19, %s3982_s19   ;;  %s2844_s18 = sphi %s2944_s18, %s3988_s18   ;;  %s2840_s17 = sphi %s2942_s17, %s3987_s17  }
   0x8   : > { %3965 = sst [smem:[#allocation7_spill]] %s2848_s19  ;;  %s2440_s26 = sadd.s32 4294967294, %s2868_s24  }
   0x9   : > { %3966 = sst [smem:[#allocation8_spill]] %s2860_s22  ;;  %s33_s27 = sadd.s32 1, %s2860_s22 }
   0xa   : > { %3967 = sst [smem:[#allocation9_spill]] %s2864_s23  ;;  %p34_p0 = scmp.ge.s32.totalorder %s33_s27, 2 }
   0xb   : > { %3968 = sst [smem:[#allocation10_spill]] %s2868_s24  ;;  %s36_s28 = sadd.s32 1, %s2864_s23 }
   0xc   : > { %p323_p1 = scmp.ne.s32.totalorder %s2848_s19, %s2844_s18  ;;  %p324_p2 = scmp.eq.s32.totalorder %s2439_s25, 3 }
   0xd   : > { %s3990_s27 = smov (%p34_p0, %s33_s27), 0  ;;  %s3992_s28 = smov (!%p34_p0, %s36_s28), %s2864_s23 }
   0xe   : > { %3969 = sst [smem:[#allocation11_spill]] %s3990_s27  ;;  %s309_s29 = ssub.s32 %s2860_s22, %s3990_s27 }
   0xf   : > { %p2993_p3 = por %p324_p2, %p323_p1  ;;  %p38_p4 = scmp.ge.s32.totalorder %s3992_s28, 2 }
  0x10   : > { %p329_p5 = scmp.ne.s32.totalorder %s2844_s18, %s2840_s17  ;;  %p330_p6 = scmp.eq.s32.totalorder %s2440_s26, 3 }
  0x11   : > { %p2449_p7 = scmp.ge.s32.totalorder %s2868_s24, 1  ;;  %s3994_s28 = smov (%p38_p4, %s3992_s28), 0 }
  0x12   : > { %3971 = sst [smem:[#allocation12_spill]] %s3994_s28  ;;  %p3002_p8 = por %p330_p6, %p329_p5 }
  0x13   : > { %p426_p9 = scmp.lt.s32.totalorder %s2868_s24, 5  ;;  %s308_s13 = ssub.s32 %s2864_s23, %s3994_s28 }
  0x14   : > { %s3972_s12 = scalar_select %p3002_p8, 1, 0 }
  0x15   : > { %s313_s14 = sadd.s32 1, %s2848_s19  ;;  %s310_s15 = sor.u32 %s309_s29, %s308_s13 }
  0x16   : > { %3973 = sst [smem:[#allocation13_spill]] %s3972_s12  ;;  %p427_p10 = pnand %p2449_p7, %p426_p9 }
  0x17   : > { %p311_p11 = scmp.eq.s32.totalorder %s310_s15, 0  ;;  %s3955_s25 = sand.u32 (!%p427_p10), 1, %s2844_s18   ;;  %vm710_vm0 = vcmask (!%p427_p10), 1043456   ;;  %vm543_vm1 = vcmask (!%p427_p10), 64512   ;;  %v2870_v2 = vmov (!%p427_p10), 0.0   ;;  %vm546_vm2 = vcmask (!%p427_p10), 58368  }
  0x18   : > { %430 = sbr.rel (%p427_p10) target bundleno = 1041 (0x411), region = 64  ;;  %s3975_s5 = sld [smem:[#allocation15_spill]] (!%p427_p10)  ;;  %544 = vst.msk [vmem:[#allocation2] sm:$0xff] (!%p427_p10), %vm543_vm1, %v2870_v2  ;;  %545 = vst.msk [vmem:[#allocation2 + $0x8] sm:$0xff] (!%p427_p10), %vm543_vm1, %v2870_v2  ;;  %v3083_v3 = vld [vmem:[%s3944_s3] ss:$0 sm:$0xff] (!%p427_p10) }
  0x19   : > { %s3011_s16 = scalar_select %p311_p11, %s2848_s19, %s313_s14  }
  0x1a   : > { %s3018_s22 = sshll.u32 (!%p427_p10), %s2852_s20, 3  ;;  %s3022_s29 = sshll.u32 (!%p427_p10), %s3955_s25, 7  ;;  %549 = vst.msk [vmem:[#allocation2 + $0x20] sm:$0xff] (!%p427_p10), %vm543_vm1, %v2870_v2  ;;  %572 = vst.msk [vmem:[#allocation2 + $0xd8] sm:$0xff] (!%p427_p10), %vm543_vm1, %v2870_v2  ;;  %v3094_v4 = vld [vmem:[%s3945_s4] ss:$0 sm:$0xff] (!%p427_p10) }
  0x1b   : > { %3974 = sst [smem:[#allocation14_spill]] %s3011_s16  ;;  %p501_p12 = scmp.lt.s32.totalorder (!%p427_p10), %s2856_s21, 1  ;;  %573 = vst.msk [vmem:[#allocation2 + $0xe0] sm:$0xff] (!%p427_p10), %vm543_vm1, %v2870_v2  ;;  %548 = vst.msk [vmem:[#allocation2 + $0x18] sm:$0xff] (!%p427_p10), %vm543_vm1, %v2870_v2  ;;  %vm661_vm3 = vcmask (!%p427_p10), 31744  }
  0x1c   : > { %p517_p13 = scmp.lt.s32.totalorder (!%p427_p10), %s3018_s22, 15  ;;  %551 = vst.msk [vmem:[#allocation2 + $0x30] sm:$0xff] (!%p427_p10), %vm543_vm1, %v2870_v2  ;;  %552 = vst.msk [vmem:[#allocation2 + $0x38] sm:$0xff] (!%p427_p10), %vm543_vm1, %v2870_v2  ;;  %s2452_s13 = sadd.s32 (!%p427_p10), 4294967295, %s3018_s22 }
  0x1d   : > { %554 = vst.msk [vmem:[#allocation2 + $0x48] sm:$0xff] (!%p427_p10), %vm543_vm1, %v2870_v2  ;;  %555 = vst.msk [vmem:[#allocation2 + $0x50] sm:$0xff] (!%p427_p10), %vm543_vm1, %v2870_v2  ;;  %p499_p0 = scmp.gt.s32.totalorder (!%p427_p10), %s2452_s13, 0  ;;  %p2453_p1 = scmp.lt.s32.totalorder (!%p427_p10), %s2452_s13, 15 }
  0x1e   : > { %v653_v0 = vld [vmem:[%s3975_s5] sm:$0xf] (!%p427_p10)  ;;  %557 = vst.msk [vmem:[#allocation2 + $0x60] sm:$0xff] (!%p427_p10), %vm543_vm1, %v2870_v2  ;;  %558 = vst.msk [vmem:[#allocation2 + $0x68] sm:$0xff] (!%p427_p10), %vm543_vm1, %v2870_v2  ;;  %s2538_s16 = sadd.s32 (!%p427_p10), 8, %s3018_s22  ;;  %p2505_p4 = scmp.le.s32.totalorder (!%p427_p10), %s2852_s20, 0 }
  0x1f   : > { %2588 = vmatprep.subr.msk.mxu0 %vm710_vm0, %v653_v0  ;;  %v3031_v1 = vld [vmem:[%s3975_s5] sm:$0xf]  ;;  %s3034_s27 = scalar_select %p501_p12, %s2856_s21, 1  ;;  %560 = vst.msk [vmem:[#allocation2 + $0x78] sm:$0xff] %vm543_vm1, %v2870_v2  ;;  %561 = vst.msk [vmem:[#allocation2 + $0x80] sm:$0xff] %vm543_vm1, %v2870_v2 }
  0x20   : > { %2589 = vmatpush3.msk.msra.mxu0 %vm710_vm0, %v653_v0  ;;  %2614 = vmatprep.subr.msk.mxu1 %vm710_vm0, %v3031_v1  ;;  %563 = vst.msk [vmem:[#allocation2 + $0x90] sm:$0xff] %vm543_vm1, %v2870_v2  ;;  %564 = vst.msk [vmem:[#allocation2 + $0x98] sm:$0xff] %vm543_vm1, %v2870_v2  ;;  %s518_s15 = scalar_select %p517_p13, %s3018_s22, 15 }
  0x21   : > { %566 = vst.msk [vmem:[#allocation2 + $0xa8] sm:$0xff] %vm543_vm1, %v2870_v2  ;;  %567 = vst.msk [vmem:[#allocation2 + $0xb0] sm:$0xff] %vm543_vm1, %v2870_v2  ;;  %2615 = vmatpush3.msk.msra.mxu1 %vm710_vm0, %v3031_v1  ;;  %s3074_s26 = sshll.u32 %s3034_s27, 5  ;;  %p3096_p2 = scmp.lt.s32.totalorder %s2538_s16, 15 }
  0x22   : > { %569 = vst.msk [vmem:[#allocation2 + $0xc0] sm:$0xff] %vm543_vm1, %v2870_v2  ;;  %570 = vst.msk [vmem:[#allocation2 + $0xc8] sm:$0xff] %vm543_vm1, %v2870_v2  ;;  %2619 = vmatprep.subr.msk.mxu1 %vm710_vm0, %v3031_v1  ;;  %s2462_s14 = sshll.u32 %s518_s15, 1 }
  0x23   : > { %547 = vst.msk [vmem:[#allocation2 + $0x10] sm:$0x3] %vm546_vm2, %v2870_v2  ;;  %550 = vst.msk [vmem:[#allocation2 + $0x28] sm:$0x3] %vm546_vm2, %v2870_v2  ;;  %s521_s25 = sadd.s32 %s2462_s14, %s3074_s26  ;;  %s3996_s16 = smov (!%p3096_p2, %s2538_s16), 15 }
  0x24   : > { %574 = vst.msk [vmem:[#allocation2 + $0xe8] sm:$0x3] %vm546_vm2, %v2870_v2  ;;  %553 = vst.msk [vmem:[#allocation2 + $0x40] sm:$0x3] %vm546_vm2, %v2870_v2  ;;  %s2464_s5 = sshll.u32 %s521_s25, 3  ;;  %s4000_s16 = smov (!%p3096_p2, %s3996_s16), 15 }
  0x25   : > { %556 = vst.msk [vmem:[#allocation2 + $0x58] sm:$0x3] %vm546_vm2, %v2870_v2  ;;  %559 = vst.msk [vmem:[#allocation2 + $0x70] sm:$0x3] %vm546_vm2, %v2870_v2  ;;  %s3089_s27 = scalar_lea.vmem %s3942_s1, %s2464_s5  ;;  %s2469_s22 = sshll.u32 %s4000_s16, 1 }
  0x26   : > { %562 = vst.msk [vmem:[#allocation2 + $0x88] sm:$0x3] %vm546_vm2, %v2870_v2  ;;  %565 = vst.msk [vmem:[#allocation2 + $0xa0] sm:$0x3] %vm546_vm2, %v2870_v2  ;;  %v575_v5 = vld [vmem:[%s3089_s27] sm:$0xff]  ;;  %v576_v6 = vld [vmem:[%s3089_s27 + $0x8] sm:$0xff]  ;;  %s535_s28 = sadd.s32 %s2469_s22, %s3074_s26 }
  0x27   : > { %568 = vst.msk [vmem:[#allocation2 + $0xb8] sm:$0x3] %vm546_vm2, %v2870_v2  ;;  %571 = vst.msk [vmem:[#allocation2 + $0xd0] sm:$0x3] %vm546_vm2, %v2870_v2  ;;  %v577_v7 = vld [vmem:[%s3089_s27 + $0x10] sm:$0xff]  ;;  %s500_s5 = scalar_select %p499_p0, %s2452_s13, 0  ;;  %v598_v8 = vmul.f32 %v3083_v3, %v575_v5  ;;  %v599_v9 = vmul.f32 %v3083_v3, %v576_v6 }
  0x28   : > { %v600_v10 = vmul.f32 %v3083_v3, %v577_v7  ;;  %v578_v11 = vld [vmem:[%s3089_s27 + $0x18] sm:$0xff]  ;;  %v579_v12 = vld [vmem:[%s3089_s27 + $0x20] sm:$0xff]  ;;  %v580_v13 = vld [vmem:[%s3089_s27 + $0x28] sm:$0xff]  ;;  %s2471_s13 = sshll.u32 %s535_s28, 3  ;;  %s3289_s28 = scalar_lea.vmem [#allocation3], %s3022_s29 }
  0x29   : > { %v601_v14 = vmul.f32 %v3083_v3, %v578_v11  ;;  %v602_v15 = vmul.f32 %v3083_v3, %v579_v12  ;;  %v581_v16 = vld [vmem:[%s3089_s27 + $0x30] sm:$0xff]  ;;  %s3998_s5 = smov (!%p2453_p1, %s500_s5), 15  ;;  %v621_v17 = vadd.f32 %v3094_v4, %v598_v8  ;;  %v622_v18 = vadd.f32 %v3094_v4, %v599_v9  ;;  %v582_v27 = vld [vmem:[%s3089_s27 + $0x38] sm:$0xff]  ;;  %v583_v28 = vld [vmem:[%s3089_s27 + $0x40] sm:$0xff] }
  0x2a   : > { %v623_v19 = vadd.f32 %v3094_v4, %v600_v10  ;;  %v603_v20 = vmul.f32 %v3083_v3, %v580_v13  ;;  %v604_v22 = vmul.f32 %v3083_v3, %v581_v16  ;;  %s2458_s17 = sshll.u32 %s3998_s5, 1  ;;  %v605_v32 = vmul.f32 %v3083_v3, %v582_v27  ;;  %v584_v37 = vld [vmem:[%s3089_s27 + $0x48] sm:$0xff]  ;;  %v585_v40 = vld [vmem:[%s3089_s27 + $0x50] sm:$0xff]  ;;  %v586_v51 = vld [vmem:[%s3089_s27 + $0x58] sm:$0xff] }
  0x2b   : > { %v624_v21 = vadd.f32 %v3094_v4, %v601_v14  ;;  %v637_v23 = vmax.f32 %v621_v17, 0.0  ;;  %v638_v24 = vmax.f32 %v622_v18, 0.0  ;;  %v625_v26 = vadd.f32 %v3094_v4, %v602_v15  ;;  %s507_s19 = sadd.s32 %s3074_s26, %s2458_s17  ;;  %s537_s26 = scalar_lea.vmem %s3943_s2, %s2471_s13  ;;  %v587_v54 = vld [vmem:[%s3089_s27 + $0x60] sm:$0xff]  ;;  %v588_v2 = vld [vmem:[%s3089_s27 + $0x68] sm:$0xff]  ;;  %v589_v6 = vld [vmem:[%s3089_s27 + $0x70] sm:$0xff] }
  0x2c   : > { %v639_v25 = vmax.f32 %v623_v19, 0.0  ;;  %s2460_s24 = sshll.u32 %s507_s19, 3  ;;  %v626_v29 = vadd.f32 %v3094_v4, %v603_v20  ;;  %v627_v31 = vadd.f32 %v3094_v4, %v604_v22  ;;  %v606_v36 = vmul.f32 %v3083_v3, %v583_v28  ;;  %v1073_v39 = vld [vmem:[%s537_s26 + $0x8] sm:$0xff]  ;;  %v1072_v44 = vld [vmem:[%s537_s26] sm:$0xff]  ;;  %v590_v14 = vld [vmem:[%s3089_s27 + $0x78] sm:$0xff] }
  0x2d   : > { %2590 = vmatprep.mubr.msk.f32.mxu0 %vm661_vm3, %v637_v23  ;;  %s509_s15 = scalar_lea.vmem %s3941_s0, %s2460_s24  ;;  %v640_v30 = vmax.f32 %v624_v21, 0.0  ;;  %v641_v35 = vmax.f32 %v625_v26, 0.0  ;;  %v628_v46 = vadd.f32 %v3094_v4, %v605_v32  ;;  %v607_v47 = vmul.f32 %v3083_v3, %v584_v37  ;;  %v3205_v26 = vld [vmem:[%s3949_s8] ss:$0 sm:$0xff] }
  0x2e   : > { %2591 = vmatmul.mubr.msk.f32.vlgmr.msra.gmra.mrb[0].mxu0 %vm661_vm3, %v638_v24  ;;  %v938_v33 = vld [vmem:[%s509_s15] sm:$0xff]  ;;  %v939_v34 = vld [vmem:[%s509_s15 + $0x8] sm:$0xff]  ;;  %v642_v42 = vmax.f32 %v626_v29, 0.0  ;;  %v643_v45 = vmax.f32 %v627_v31, 0.0  ;;  %v1075_v48 = vmul.f32 %v3083_v3, %v1073_v39  ;;  %v629_v49 = vadd.f32 %v3094_v4, %v606_v36 }
  0x2f   : > { %2593 = vmatprep.mubr.msk.f32.mxu0 %vm661_vm3, %v639_v25  ;;  %v947_v38 = vmul.f32 %v3083_v3, %v938_v33  ;;  %v948_v41 = vmul.f32 %v3083_v3, %v939_v34  ;;  %v608_v50 = vmul.f32 %v3083_v3, %v585_v40  ;;  %v1074_v56 = vmul.f32 %v3083_v3, %v1072_v44 }
  0x30   : > { %v1077_v55 = vadd.f32 %v3094_v4, %v1075_v48  ;;  %v644_v58 = vmax.f32 %v628_v46, 0.0  ;;  %v630_v59 = vadd.f32 %v3094_v4, %v607_v47  ;;  %v609_v60 = vmul.f32 %v3083_v3, %v586_v51 }
  0x31   : > { %v956_v43 = vadd.f32 %v3094_v4, %v947_v38  ;;  %v957_v53 = vadd.f32 %v3094_v4, %v948_v41  ;;  %v1076_v61 = vadd.f32 %v3094_v4, %v1074_v56  ;;  %v645_v62 = vmax.f32 %v629_v49, 0.0 }
  0x32   : > { %2594 = vmatmul.mubr.msk.f32.gmra.mrb[2].mxu0 %vm661_vm3, %v640_v30  ;;  %v631_v63 = vadd.f32 %v3094_v4, %v608_v50  ;;  %v610_v0 = vmul.f32 %v3083_v3, %v587_v54  ;;  %v1079_v5 = vmax.f32 %v1077_v55, 0.0  ;;  %v646_v8 = vmax.f32 %v630_v59, 0.0 }
  0x33   : > { %2596 = vmatprep.mubr.msk.f32.mxu0 %vm661_vm3, %v641_v35  ;;  %v958_v52 = vmax.f32 %v956_v43, 0.0  ;;  %v959_v57 = vmax.f32 %v957_v53, 0.0  ;;  %v1078_v7 = vmax.f32 %v1076_v61, 0.0  ;;  %v632_v9 = vadd.f32 %v3094_v4, %v609_v60 }
  0x34   : > { %v611_v10 = vmul.f32 %v3083_v3, %v588_v2  ;;  %v647_v11 = vmax.f32 %v631_v63, 0.0  ;;  %v633_v12 = vadd.f32 %v3094_v4, %v610_v0  ;;  %v612_v13 = vmul.f32 %v3083_v3, %v589_v6 }
  0x35   : > { %2616 = vmatprep.mubr.msk.f32.mxu1 %vm661_vm3, %v958_v52  ;;  %v613_v16 = vmul.f32 %v3083_v3, %v590_v14  ;;  %v3194_v3 = vld [vmem:[%s3947_s6] ss:$0 sm:$0xff] }
  0x36   : > { %2597 = vmatmul.mubr.msk.f32.gmra.mrb[4].mxu0 %vm661_vm3, %v642_v42  ;;  %2617 = vmatmul.mubr.msk.f32.vlgmr.msra.gmra.mrb[0].mxu1 %vm661_vm3, %v959_v57  ;;  %v634_v15 = vadd.f32 %v3094_v4, %v611_v10  ;;  %v649_v17 = vmax.f32 %v633_v12, 0.0  ;;  %v635_v18 = vadd.f32 %v3094_v4, %v612_v13 }
  0x37   : > { %2599 = vmatprep.mubr.msk.f32.mxu0 %vm661_vm3, %v643_v45  ;;  %2620 = vmatpush3.msk.msra.mxu1 %vm710_vm0, %v3031_v1  ;;  %v648_v1 = vmax.f32 %v632_v9, 0.0  ;;  %v636_v20 = vadd.f32 %v3094_v4, %v613_v16  ;;  %v3199_v4 = vld [vmem:[%s3948_s7] ss:$0 sm:$0xff] }
  0x38   : > { %2621 = vmatprep.mubr.msk.f32.mxu1 %vm661_vm3, %v1078_v7  ;;  %v650_v19 = vmax.f32 %v634_v15, 0.0  ;;  %v651_v21 = vmax.f32 %v635_v18, 0.0 }
  0x39   : > { %v652_v22 = vmax.f32 %v636_v20, 0.0 }
  0x3a   : > { %2600 = vmatmul.mubr.msk.f32.gmra.mrb[6].mxu0 %vm661_vm3, %v644_v58  ;;  %2622 = vmatmul.mubr.msk.f32.vlgmr.msra.gmra.mrb[2].mxu1 %vm661_vm3, %v1079_v5 }
  0x3b   : > { %2602 = vmatprep.mubr.msk.f32.mxu0 %vm661_vm3, %v645_v62 }
  0x3e   : > { %2603 = vmatmul.mubr.msk.f32.gmra.mrb[8].mxu0 %vm661_vm3, %v646_v8 }
  0x3f   : > { %2605 = vmatprep.mubr.msk.f32.mxu0 %vm661_vm3, %v647_v11 }
  0x42   : > { %2606 = vmatmul.mubr.msk.f32.gmra.mrb[10].mxu0 %vm661_vm3, %v648_v1 }
  0x43   : > { %2608 = vmatprep.mubr.msk.f32.mxu0 %vm661_vm3, %v649_v17 }
  0x46   : > { %2609 = vmatmul.mubr.msk.f32.gmra.mrb[12].mxu0 %vm661_vm3, %v650_v19 }
  0x47   : > { %2611 = vmatprep.mubr.msk.f32.mxu0 %vm661_vm3, %v651_v21 }
  0x4a   : > { %2612 = vmatmul.mubr.msk.f32.gmra.mrb[14].mxu0 %vm661_vm3, %v652_v22 }
 0x101   : > { %v2592_v23 = vpop.f32.mrb[0].mxu0 }
 0x102   : > { %v786_v24 = vadd.f32 %v2592_v23, %v3194_v3  ;;  %v780_v25 = vpop.f32.mrb[1].mxu0 }
 0x103   : > { %v781_v27 = vadd.f32 %v3194_v3, %v780_v25 }
 0x104   : > { %v867_v28 = vmul.f32 %v3199_v4, %v786_v24 }
 0x105   : > { %v866_v29 = vmul.f32 %v3199_v4, %v781_v27  ;;  %v2595_v30 = vpop.f32.mrb[2].mxu0 }
 0x106   : > { %v890_v31 = vadd.f32 %v3205_v26, %v867_v28  ;;  %v796_v32 = vadd.f32 %v2595_v30, %v3194_v3  ;;  %v790_v33 = vpop.f32.mrb[3].mxu0 }
 0x107   : > { %v889_v34 = vadd.f32 %v3205_v26, %v866_v29  ;;  %v791_v35 = vadd.f32 %v3194_v3, %v790_v33 }
 0x108   : > { %v906_v36 = vmax.f32 %v890_v31, 0.0  ;;  %v869_v37 = vmul.f32 %v3199_v4, %v796_v32 }
 0x109   : > { %v905_v38 = vmax.f32 %v889_v34, 0.0  ;;  %v868_v39 = vmul.f32 %v3199_v4, %v791_v35  ;;  %v2598_v40 = vpop.f32.mrb[4].mxu0  ;;  %v2618_v44 = vpop.f32.mrb[0].mxu1 }
 0x10a   : > { %923 = vst.msk [vmem:[#allocation2 + $0x21] sm:$0xff] %vm543_vm1, %v906_v36  ;;  %v892_v41 = vadd.f32 %v3205_v26, %v869_v37  ;;  %v806_v42 = vadd.f32 %v2598_v40, %v3194_v3  ;;  %v800_v43 = vpop.f32.mrb[5].mxu0  ;;  %v1049_v47 = vadd.f32 %v2618_v44, %v3194_v3  ;;  %v1043_v48 = vpop.f32.mrb[1].mxu1 }
 0x10b   : > { %922 = vst.msk [vmem:[#allocation2 + $0x19] sm:$0xff] %vm543_vm1, %v905_v38  ;;  %v891_v45 = vadd.f32 %v3205_v26, %v868_v39  ;;  %v801_v46 = vadd.f32 %v3194_v3, %v800_v43  ;;  %v1044_v51 = vadd.f32 %v3194_v3, %v1043_v48 }
 0x10c   : > { %v908_v49 = vmax.f32 %v892_v41, 0.0  ;;  %v871_v50 = vmul.f32 %v3199_v4, %v806_v42  ;;  %v1060_v55 = vmul.f32 %v3199_v4, %v1049_v47 }
 0x10d   : > { %v907_v52 = vmax.f32 %v891_v45, 0.0  ;;  %v870_v53 = vmul.f32 %v3199_v4, %v801_v46  ;;  %v2601_v54 = vpop.f32.mrb[6].mxu0  ;;  %v1059_v59 = vmul.f32 %v3199_v4, %v1044_v51  ;;  %v2623_v60 = vpop.f32.mrb[2].mxu1 }
 0x10e   : > { %925 = vst.msk [vmem:[#allocation2 + $0x39] sm:$0xff] %vm543_vm1, %v908_v49  ;;  %v894_v56 = vadd.f32 %v3205_v26, %v871_v50  ;;  %v816_v57 = vadd.f32 %v2601_v54, %v3194_v3  ;;  %v810_v58 = vpop.f32.mrb[7].mxu0  ;;  %v3235_v63 = vadd.f32 %v3205_v26, %v1060_v55  ;;  %v1158_v0 = vadd.f32 %v2623_v60, %v3194_v3  ;;  %v1152_v2 = vpop.f32.mrb[3].mxu1 }
 0x10f   : > { %924 = vst.msk [vmem:[#allocation2 + $0x31] sm:$0xff] %vm543_vm1, %v907_v52  ;;  %v893_v61 = vadd.f32 %v3205_v26, %v870_v53  ;;  %v811_v62 = vadd.f32 %v3194_v3, %v810_v58  ;;  %v3240_v7 = vadd.f32 %v3205_v26, %v1059_v59  ;;  %v1153_v8 = vadd.f32 %v3194_v3, %v1152_v2 }
 0x110   : > { %v910_v5 = vmax.f32 %v894_v56, 0.0  ;;  %v873_v6 = vmul.f32 %v3199_v4, %v816_v57  ;;  %v1071_v12 = vmax.f32 %v3235_v63, 0.0  ;;  %v1162_v13 = vmul.f32 %v3199_v4, %v1158_v0 }
 0x111   : > { %v909_v9 = vmax.f32 %v893_v61, 0.0  ;;  %v872_v10 = vmul.f32 %v3199_v4, %v811_v62  ;;  %v2604_v11 = vpop.f32.mrb[8].mxu0  ;;  %v1070_v16 = vmax.f32 %v3240_v7, 0.0  ;;  %v1161_v17 = vmul.f32 %v3199_v4, %v1153_v8 }
 0x112   : > { %927 = vst.msk [vmem:[#allocation2 + $0x51] sm:$0xff] %vm543_vm1, %v910_v5  ;;  %v896_v14 = vadd.f32 %v3205_v26, %v873_v6  ;;  %v826_v1 = vadd.f32 %v2604_v11, %v3194_v3  ;;  %v820_v15 = vpop.f32.mrb[9].mxu0  ;;  %v1164_v20 = vadd.f32 %v3205_v26, %v1162_v13  ;;  %1172 = vst.msk [vmem:[#allocation2 + $0x9] sm:$0xff] (!%p2505_p4), %vm543_vm1, %v1071_v12 }
 0x113   : > { %926 = vst.msk [vmem:[#allocation2 + $0x49] sm:$0xff] %vm543_vm1, %v909_v9  ;;  %v895_v18 = vadd.f32 %v3205_v26, %v872_v10  ;;  %v821_v19 = vadd.f32 %v3194_v3, %v820_v15  ;;  %v1163_v23 = vadd.f32 %v3205_v26, %v1161_v17  ;;  %1171 = vst.msk [vmem:[#allocation2 + $0x1] sm:$0xff] (!%p2505_p4), %vm543_vm1, %v1070_v16 }
 0x114   : > { %v912_v21 = vmax.f32 %v896_v14, 0.0  ;;  %v875_v22 = vmul.f32 %v3199_v4, %v826_v1  ;;  %v1166_v28 = vmax.f32 %v1164_v20, 0.0 }
 0x115   : > { %v911_v24 = vmax.f32 %v895_v18, 0.0  ;;  %v874_v25 = vmul.f32 %v3199_v4, %v821_v19  ;;  %v2607_v27 = vpop.f32.mrb[10].mxu0  ;;  %v1165_v32 = vmax.f32 %v1163_v23, 0.0 }
 0x116   : > { %929 = vst.msk [vmem:[#allocation2 + $0x69] sm:$0xff] %vm543_vm1, %v912_v21  ;;  %v898_v29 = vadd.f32 %v3205_v26, %v875_v22  ;;  %v836_v30 = vadd.f32 %v2607_v27, %v3194_v3  ;;  %v830_v31 = vpop.f32.mrb[11].mxu0 }
 0x117   : > { %928 = vst.msk [vmem:[#allocation2 + $0x61] sm:$0xff] %vm543_vm1, %v911_v24  ;;  %v897_v33 = vadd.f32 %v3205_v26, %v874_v25  ;;  %v831_v34 = vadd.f32 %v3194_v3, %v830_v31 }
 0x118   : > { %v914_v35 = vmax.f32 %v898_v29, 0.0  ;;  %v877_v36 = vmul.f32 %v3199_v4, %v836_v30 }
 0x119   : > { %v913_v37 = vmax.f32 %v897_v33, 0.0  ;;  %v876_v38 = vmul.f32 %v3199_v4, %v831_v34  ;;  %v2610_v39 = vpop.f32.mrb[12].mxu0 }
 0x11a   : > { %931 = vst.msk [vmem:[#allocation2 + $0x81] sm:$0xff] %vm543_vm1, %v914_v35  ;;  %v900_v40 = vadd.f32 %v3205_v26, %v877_v36  ;;  %v846_v41 = vadd.f32 %v2610_v39, %v3194_v3  ;;  %v840_v42 = vpop.f32.mrb[13].mxu0 }
 0x11b   : > { %930 = vst.msk [vmem:[#allocation2 + $0x79] sm:$0xff] %vm543_vm1, %v913_v37  ;;  %v899_v43 = vadd.f32 %v3205_v26, %v876_v38  ;;  %v841_v44 = vadd.f32 %v3194_v3, %v840_v42 }
 0x11c   : > { %v916_v45 = vmax.f32 %v900_v40, 0.0  ;;  %v879_v46 = vmul.f32 %v3199_v4, %v846_v41 }
 0x11d   : > { %v915_v47 = vmax.f32 %v899_v43, 0.0  ;;  %v878_v48 = vmul.f32 %v3199_v4, %v841_v44  ;;  %v2613_v49 = vpop.f32.mrb[14].mxu0 }
 0x11e   : > { %933 = vst.msk [vmem:[#allocation2 + $0x99] sm:$0xff] %vm543_vm1, %v916_v45  ;;  %v902_v50 = vadd.f32 %v3205_v26, %v879_v46  ;;  %v856_v51 = vadd.f32 %v2613_v49, %v3194_v3  ;;  %v850_v52 = vpop.f32.mrb[15].mxu0 }
 0x11f   : > { %932 = vst.msk [vmem:[#allocation2 + $0x91] sm:$0xff] %vm543_vm1, %v915_v47  ;;  %v901_v53 = vadd.f32 %v3205_v26, %v878_v48  ;;  %v851_v54 = vadd.f32 %v3194_v3, %v850_v52 }
 0x120   : > { %v918_v55 = vmax.f32 %v902_v50, 0.0  ;;  %v881_v56 = vmul.f32 %v3199_v4, %v856_v51 }
 0x121   : > { %v917_v57 = vmax.f32 %v901_v53, 0.0  ;;  %v880_v58 = vmul.f32 %v3199_v4, %v851_v54  ;;  %1170 = sbr.rel (%p2505_p4) target bundleno = 296 (0x128), region = 68 }
 0x122   : > { %935 = vst.msk [vmem:[#allocation2 + $0xb1] sm:$0xff] %vm543_vm1, %v918_v55  ;;  %v904_v59 = vadd.f32 %v3205_v26, %v881_v56 }
 0x123   : > { %934 = vst.msk [vmem:[#allocation2 + $0xa9] sm:$0xff] %vm543_vm1, %v917_v57  ;;  %v903_v60 = vadd.f32 %v3205_v26, %v880_v58 }
 0x124   : > { %v920_v61 = vmax.f32 %v904_v59, 0.0 }
 0x125   : > { %v919_v62 = vmax.f32 %v903_v60, 0.0 }
 0x126   : > { %937 = vst.msk [vmem:[#allocation2 + $0xc9] sm:$0xff] %vm543_vm1, %v920_v61 }
 0x127   : > { %936 = vst.msk [vmem:[#allocation2 + $0xc1] sm:$0xff] %vm543_vm1, %v919_v62 }
 0x128 PF: > { %p2506_p5 = scmp.ge.s32.totalorder %s2852_s20, 1 }
 0x129   : > { %1178 = vst.msk [vmem:[#allocation2 + $0xd9] sm:$0xff] (!%p2506_p5), %vm543_vm1, %v1165_v32  ;;  %1179 = vst.msk [vmem:[#allocation2 + $0xe1] sm:$0xff] (!%p2506_p5), %vm543_vm1, %v1166_v28 }
 0x12a   : > { %1176 = sbr.rel (%p2506_p5) target bundleno = 305 (0x131), region = 72 }
 0x131 PF: > { %v3299_v3 = vld [vmem:[#allocation2 + $0x32] sm:$0xff]  ;;  %s2871_s29 = smov 16   ;;  %s2872_s12 = smov 8   ;;  %v3307_v26 = vld [vmem:[#allocation2 + $0x3a] sm:$0xff]  ;;  %v3317_v2 = vld [vmem:[#allocation2 + $0x48] sm:$0xff]  ;;  %vm1853_vm4 = vcmask 130048  }
 0x132   : > { %v3301_v4 = vld [vmem:[#allocation2 + $0x31] sm:$0xff]  ;;  %1413 = vrot.lane.b32.xlu1 %v3299_v3, %s2871_s29  ;;  %v3309_v63 = vld [vmem:[#allocation2 + $0x39] sm:$0xff]  ;;  %s2873_s25 = smov 24   ;;  %v3323_v5 = vld [vmem:[#allocation2 + $0x49] sm:$0xff]  ;;  %s2874_s15 = smov 32   ;;  %vm1870_vm5 = vcmask 195584  }
 0x133   : > { %1349 = vrot.lane.b32.xlu0 %v3301_v4, %s2872_s12  ;;  %v3315_v0 = vld [vmem:[#allocation2 + $0x50] sm:$0xff]  ;;  %v1972_v8 = vld [vmem:[%s3950_s9] sm:$0xff]  ;;  %v1973_v9 = vld [vmem:[%s3950_s9 + $0x8] sm:$0xff]  ;;  %s2875_s23 = smov 40   ;;  %s2876_s26 = smov 48   ;;  %vm1887_vm6 = vcmask 261120  }
 0x134   : > { %v3329_v6 = vld [vmem:[#allocation2 + $0x4a] sm:$0xff]  ;;  %v2666_v10 = vpack.c.bf16 %v1973_v9, %v1972_v8  ;;  %v1975_v12 = vld [vmem:[%s3950_s9 + $0x18] sm:$0xff]  ;;  %v3353_v14 = vld [vmem:[#allocation2 + $0x60] sm:$0xff]  ;;  %s2877_s24 = smov 56   ;;  %s2878_s14 = smov 64   ;;  %vm1904_vm7 = vcmask 326656  }
 0x135   : > { %v3331_v7 = vld [vmem:[#allocation2 + $0x51] sm:$0xff]  ;;  %v1976_v15 = vld [vmem:[%s3950_s9 + $0x20] sm:$0xff]  ;;  %v1977_v16 = vld [vmem:[%s3950_s9 + $0x28] sm:$0xff]  ;;  %vm1921_vm8 = vcmask 392192   ;;  %vm1938_vm9 = vcmask 457728   ;;  %vm1955_vm10 = vcmask 523264  }
 0x136   : > { %1415 = vrot.lane.b32.xlu1 %v3307_v26, %s2871_s29  ;;  %2682 = vmatprep.subr.bf16.mxu1 %v2666_v10  ;;  %v1974_v11 = vld [vmem:[%s3950_s9 + $0x10] sm:$0xff]  ;;  %v2674_v17 = vpack.c.bf16 %v1977_v16, %v1976_v15  ;;  %v1979_v19 = vld [vmem:[%s3950_s9 + $0x38] sm:$0xff]  ;;  %v1297_v20 = vld [vmem:[#allocation2 + $0x61] sm:$0xff]  ;;  %vm1988_vm11 = vcmask 588800   ;;  %vm2278_vm12 = vcmask 293888   ;;  %s2880_s16 = smov [#allocation3]  }
 0x137   : > { %1351 = vrot.lane.b32.xlu0 %v3309_v63, %s2872_s12  ;;  %2667 = vmatprep.subr.bf16.mxu0 %v2666_v10  ;;  %v2670_v13 = vpack.c.bf16 %v1975_v12, %v1974_v11  ;;  %v3355_v1 = vld [vmem:[#allocation2 + $0x52] sm:$0xff]  ;;  %v3377_v21 = vld [vmem:[#allocation2 + $0x68] sm:$0xff]  ;;  %v1980_v23 = vld [vmem:[%s3950_s9 + $0x40] sm:$0xff] }
 0x138   : > { %2687 = vmatpush3.bf16.msra.mxu1 %v2666_v10  ;;  %2669 = vmatpush3.bf16.msra.mxu0 %v2666_v10  ;;  %v1978_v18 = vld [vmem:[%s3950_s9 + $0x30] sm:$0xff]  ;;  %v1313_v24 = vld [vmem:[#allocation2 + $0x62] sm:$0xff]  ;;  %v3396_v28 = vld [vmem:[#allocation2 + $0x78] sm:$0xff] }
 0x139   : > { %2683 = vmatprep.subr.bf16.mxu1 %v2670_v13  ;;  %2671 = vmatprep.subr.bf16.mxu0 %v2670_v13  ;;  %v2678_v22 = vpack.c.bf16 %v1979_v19, %v1978_v18  ;;  %v1298_v25 = vld [vmem:[#allocation2 + $0x69] sm:$0xff]  ;;  %v1299_v29 = vld [vmem:[#allocation2 + $0x79] sm:$0xff]  ;;  %v1300_v32 = vld [vmem:[#allocation2 + $0x81] sm:$0xff] }
 0x13a   : > { %1479 = vrot.lane.b32.xlu1 %v3315_v0, %s2873_s25  ;;  %v1314_v27 = vld [vmem:[#allocation2 + $0x6a] sm:$0xff]  ;;  %v3404_v30 = vld [vmem:[#allocation2 + $0x80] sm:$0xff]  ;;  %v3428_v36 = vld [vmem:[#allocation2 + $0x98] sm:$0xff] }
 0x13b   : > { %1477 = vrot.lane.b32.xlu0 %v3317_v2, %s2873_s25  ;;  %v1315_v31 = vld [vmem:[#allocation2 + $0x7a] sm:$0xff]  ;;  %v1316_v33 = vld [vmem:[#allocation2 + $0x82] sm:$0xff]  ;;  %v3420_v34 = vld [vmem:[#allocation2 + $0x90] sm:$0xff] }
 0x13c   : > { %2688 = vmatpush3.bf16.msra.mxu1 %v2670_v13  ;;  %2673 = vmatpush3.bf16.msra.mxu0 %v2670_v13  ;;  %v1301_v35 = vld [vmem:[#allocation2 + $0x91] sm:$0xff]  ;;  %v1302_v38 = vld [vmem:[#allocation2 + $0x99] sm:$0xff]  ;;  %v1196_v39 = vld [vmem:[#allocation2 + $0x1] sm:$0xff] }
 0x13d   : > { %2684 = vmatprep.subr.bf16.mxu1 %v2674_v17  ;;  %2675 = vmatprep.subr.bf16.mxu0 %v2674_v17  ;;  %v1317_v37 = vld [vmem:[#allocation2 + $0x92] sm:$0xff]  ;;  %v1197_v40 = vld [vmem:[#allocation2 + $0x9] sm:$0xff]  ;;  %v1318_v41 = vld [vmem:[#allocation2 + $0x9a] sm:$0xff] }
 0x13e   : > { %1353 = vrot.lane.b32.xlu1 %v3323_v5, %s2872_s12  ;;  %v1212_v44 = vld [vmem:[#allocation2 + $0x2] sm:$0xff]  ;;  %v1213_v49 = vld [vmem:[#allocation2 + $0xa] sm:$0xff]  ;;  %v3459_v53 = vld [vmem:[#allocation2 + $0x18] sm:$0xff] }
 0x13f   : > { %1541 = vrot.lane.b32.xlu0 %v3323_v5, %s2874_s15  ;;  %v3452_v50 = vld [vmem:[#allocation2 + $0xa8] sm:$0xff]  ;;  %v3464_v56 = vld [vmem:[#allocation2 + $0xb0] sm:$0xff]  ;;  %v3474_v59 = vld [vmem:[#allocation2 + $0x20] sm:$0xff] }
 0x140   : > { %2689 = vmatpush3.bf16.msra.mxu1 %v2674_v17  ;;  %2677 = vmatpush3.bf16.msra.mxu0 %v2674_v17  ;;  %v1303_v60 = vld [vmem:[#allocation2 + $0xa9] sm:$0xff]  ;;  %v1244_v8 = vld [vmem:[#allocation2 + $0x19] sm:$0xff]  ;;  %v1304_v12 = vld [vmem:[#allocation2 + $0xb1] sm:$0xff] }
 0x141   : > { %2685 = vmatprep.subr.bf16.mxu1 %v2678_v22  ;;  %2679 = vmatprep.subr.bf16.mxu0 %v2678_v22  ;;  %v3483_v11 = vld [vmem:[#allocation2 + $0x30] sm:$0xff] }
 0x142   : > { %1605 = vrot.lane.b32.xlu1 %v3329_v6, %s2875_s23  ;;  %v1319_v18 = vld [vmem:[#allocation2 + $0xaa] sm:$0xff] }
 0x143   : > { %1543 = vrot.lane.b32.xlu0 %v3331_v7, %s2874_s15 }
 0x144   : > { %2690 = vmatpush3.bf16.msra.mxu1 %v2678_v22  ;;  %2681 = vmatpush3.bf16.msra.mxu0 %v2678_v22 }
 0x145   : > { %2686 = vmatprep.subr.mxu1 %v1980_v23  ;;  %2640 = vmatprep.subr.mxu0 %v1980_v23 }
 0x146   : > { %1417 = vrot.lane.b32.xlu1 %v3329_v6, %s2871_s29 }
 0x147   : > { %1355 = vrot.lane.b32.xlu0 %v3331_v7, %s2872_s12 }
 0x148   : > { %2691 = vmatpush3.msra.mxu1 %v1980_v23  ;;  %2641 = vmatpush3.msra.mxu0 %v1980_v23  ;;  %v3496_v23 = vld [vmem:[#allocation2 + $0x38] sm:$0xff] }
 0x14a   : > { %1669 = vrot.lane.b32.xlu1 %v3353_v14, %s2876_s26 }
 0x14b   : > { %1607 = vrot.lane.b32.xlu0 %v3355_v1, %s2875_s23 }
 0x14e   : > { %1481 = vrot.lane.b32.xlu1 %v3353_v14, %s2873_s25 }
 0x14f   : > { %1419 = vrot.lane.b32.xlu0 %v3355_v1, %s2871_s29 }
 0x152   : > { %1733 = vrot.lane.b32.xlu1 %v1297_v20, %s2877_s24 }
 0x153   : > { %1671 = vrot.lane.b32.xlu0 %v3377_v21, %s2876_s26 }
 0x156   : > { %1545 = vrot.lane.b32.xlu1 %v1297_v20, %s2874_s15 }
 0x157   : > { %1483 = vrot.lane.b32.xlu0 %v3377_v21, %s2873_s25 }
 0x15a   : > { %1797 = vrot.lane.b32.xlu1 %v1313_v24, %s2878_s14 }
 0x15b   : > { %1735 = vrot.lane.b32.xlu0 %v1298_v25, %s2877_s24 }
 0x15e   : > { %1547 = vrot.lane.b32.xlu1 %v1298_v25, %s2874_s15 }
 0x15f   : > { %1357 = vrot.lane.b32.xlu0 %v1297_v20, %s2872_s12 }
 0x162   : > { %1799 = vrot.lane.b32.xlu1 %v1314_v27, %s2878_s14 }
 0x163   : > { %1609 = vrot.lane.b32.xlu0 %v1313_v24, %s2875_s23 }
 0x166   : > { %1421 = vrot.lane.b32.xlu1 %v1313_v24, %s2871_s29 }
 0x167   : > { %1359 = vrot.lane.b32.xlu0 %v1298_v25, %s2872_s12 }
 0x16a   : > { %1673 = vrot.lane.b32.xlu1 %v3396_v28, %s2876_s26 }
 0x16b   : > { %1611 = vrot.lane.b32.xlu0 %v1314_v27, %s2875_s23 }
 0x16e   : > { %1485 = vrot.lane.b32.xlu1 %v3396_v28, %s2873_s25 }
 0x16f   : > { %1423 = vrot.lane.b32.xlu0 %v1314_v27, %s2871_s29 }
 0x172   : > { %1737 = vrot.lane.b32.xlu1 %v1299_v29, %s2877_s24 }
 0x173   : > { %1675 = vrot.lane.b32.xlu0 %v3404_v30, %s2876_s26 }
 0x176   : > { %1549 = vrot.lane.b32.xlu1 %v1299_v29, %s2874_s15 }
 0x177   : > { %1487 = vrot.lane.b32.xlu0 %v3404_v30, %s2873_s25 }
 0x17a   : > { %1801 = vrot.lane.b32.xlu1 %v1315_v31, %s2878_s14 }
 0x17b   : > { %1739 = vrot.lane.b32.xlu0 %v1300_v32, %s2877_s24 }
 0x17e   : > { %1551 = vrot.lane.b32.xlu1 %v1300_v32, %s2874_s15 }
 0x17f   : > { %1361 = vrot.lane.b32.xlu0 %v1299_v29, %s2872_s12  ;;  %v1245_v29 = vld [vmem:[#allocation2 + $0x21] sm:$0xff] }
 0x182   : > { %1803 = vrot.lane.b32.xlu1 %v1316_v33, %s2878_s14 }
 0x183   : > { %1613 = vrot.lane.b32.xlu0 %v1315_v31, %s2875_s23 }
 0x186   : > { %1425 = vrot.lane.b32.xlu1 %v1315_v31, %s2871_s29 }
 0x187   : > { %1363 = vrot.lane.b32.xlu0 %v1300_v32, %s2872_s12 }
 0x18a   : > { %1677 = vrot.lane.b32.xlu1 %v3420_v34, %s2876_s26 }
 0x18b   : > { %1615 = vrot.lane.b32.xlu0 %v1316_v33, %s2875_s23 }
 0x18e   : > { %1489 = vrot.lane.b32.xlu1 %v3420_v34, %s2873_s25 }
 0x18f   : > { %1427 = vrot.lane.b32.xlu0 %v1316_v33, %s2871_s29 }
 0x192   : > { %1741 = vrot.lane.b32.xlu1 %v1301_v35, %s2877_s24 }
 0x193   : > { %1679 = vrot.lane.b32.xlu0 %v3428_v36, %s2876_s26 }
 0x196   : > { %1553 = vrot.lane.b32.xlu1 %v1301_v35, %s2874_s15 }
 0x197   : > { %1491 = vrot.lane.b32.xlu0 %v3428_v36, %s2873_s25 }
 0x19a   : > { %1805 = vrot.lane.b32.xlu1 %v1317_v37, %s2878_s14 }
 0x19b   : > { %1743 = vrot.lane.b32.xlu0 %v1302_v38, %s2877_s24 }
 0x19e   : > { %1365 = vrot.lane.b32.xlu1 %v1301_v35, %s2872_s12 }
 0x19f   : > { %1341 = vrot.lane.b32.xlu0 %v1196_v39, %s2872_s12  ;;  %v1260_v39 = vld [vmem:[#allocation2 + $0x1a] sm:$0xff] }
 0x1a2   : > { %1617 = vrot.lane.b32.xlu1 %v1317_v37, %s2875_s23 }
 0x1a3   : > { %1555 = vrot.lane.b32.xlu0 %v1302_v38, %s2874_s15 }
 0x1a4   : > { %v1414_v42 = vpop.permute.xlu1 %1413 }
 0x1a5   : > { %v1350_v43 = vpop.permute.xlu0 %1349 }
 0x1a6   : > { %1343 = vrot.lane.b32.xlu1 %v1197_v40, %s2872_s12  ;;  %v1841_v13 = vsel %vm543_vm1, %v3483_v11, %v1350_v43 }
 0x1a7   : > { %1807 = vrot.lane.b32.xlu0 %v1318_v41, %s2878_s14  ;;  %v1858_v17 = vsel %vm1853_vm4, %v1841_v13, %v1414_v42 }
 0x1a8   : > { %v3444_v45 = vpop.permute.xlu1 %1415 }
 0x1a9   : > { %v1352_v46 = vpop.permute.xlu0 %1351 }
 0x1aa   : > { %1405 = vrot.lane.b32.xlu1 %v1212_v44, %s2871_s29  ;;  %v1842_v31 = vsel %vm543_vm1, %v3496_v23, %v1352_v46 }
 0x1ab   : > { %1367 = vrot.lane.b32.xlu0 %v1302_v38, %s2872_s12  ;;  %v1859_v38 = vsel %vm1853_vm4, %v1842_v31, %v3444_v45  ;;  %v1320_v45 = vld [vmem:[#allocation2 + $0xb2] sm:$0xff] }
 0x1ac   : > { %v3448_v47 = vpop.permute.xlu1 %1479 }
 0x1ad   : > { %v1478_v48 = vpop.permute.xlu0 %1477  ;;  %v1876_v40 = vsel %vm1870_vm5, %v1859_v38, %v3448_v47 }
 0x1ae   : > { %1619 = vrot.lane.b32.xlu1 %v1318_v41, %s2875_s23  ;;  %v1875_v19 = vsel %vm1870_vm5, %v1858_v17, %v1478_v48 }
 0x1af   : > { %1429 = vrot.lane.b32.xlu0 %v1317_v37, %s2871_s29 }
 0x1b0   : > { %v3454_v51 = vpop.permute.xlu1 %1353 }
 0x1b1   : > { %v1542_v52 = vpop.permute.xlu0 %1541 }
 0x1b2   : > { %1407 = vrot.lane.b32.xlu1 %v1213_v49, %s2871_s29  ;;  %v1892_v24 = vsel %vm1887_vm6, %v1875_v19, %v1542_v52 }
 0x1b3   : > { %1681 = vrot.lane.b32.xlu0 %v3452_v50, %s2876_s26 }
 0x1b4   : > { %v1606_v54 = vpop.permute.xlu1 %1605 }
 0x1b5   : > { %v1544_v55 = vpop.permute.xlu0 %1543  ;;  %v1909_v25 = vsel %vm1904_vm7, %v1892_v24, %v1606_v54 }
 0x1b6   : > { %1469 = vrot.lane.b32.xlu1 %v3459_v53, %s2873_s25  ;;  %v1893_v43 = vsel %vm1887_vm6, %v1876_v40, %v1544_v55 }
 0x1b7   : > { %1431 = vrot.lane.b32.xlu0 %v1318_v41, %s2871_s29 }
 0x1b8   : > { %v3466_v57 = vpop.permute.xlu1 %1417 }
 0x1b9   : > { %v3468_v58 = vpop.permute.xlu0 %1355 }
 0x1ba   : > { %1683 = vrot.lane.b32.xlu1 %v3464_v56, %s2876_s26 }
 0x1bb   : > { %1493 = vrot.lane.b32.xlu0 %v3452_v50, %s2873_s25 }
 0x1bc   : > { %v1670_v61 = vpop.permute.xlu1 %1669 }
 0x1bd   : > { %v1608_v62 = vpop.permute.xlu0 %1607  ;;  %v1926_v27 = vsel %vm1921_vm8, %v1909_v25, %v1670_v61 }
 0x1be   : > { %1471 = vrot.lane.b32.xlu1 %v3474_v59, %s2873_s25  ;;  %v1910_v44 = vsel %vm1904_vm7, %v1893_v43, %v1608_v62  ;;  %v1261_v62 = vld [vmem:[#allocation2 + $0x22] sm:$0xff] }
 0x1bf   : > { %1745 = vrot.lane.b32.xlu0 %v1303_v60, %s2877_s24 }
 0x1c0   : > { %v3479_v9 = vpop.permute.xlu1 %1481 }
 0x1c1   : > { %v3481_v10 = vpop.permute.xlu0 %1419 }
 0x1c2   : > { %1533 = vrot.lane.b32.xlu1 %v1244_v8, %s2874_s15 }
 0x1c3   : > { %1495 = vrot.lane.b32.xlu0 %v3464_v56, %s2873_s25 }
 0x1c4   : > { %v1734_v15 = vpop.permute.xlu1 %1733 }
 0x1c5   : > { %v1672_v16 = vpop.permute.xlu0 %1671  ;;  %v1943_v32 = vsel %vm1938_vm9, %v1926_v27, %v1734_v15 }
 0x1c6   : > { %1747 = vrot.lane.b32.xlu1 %v1304_v12, %s2877_s24  ;;  %v1927_v46 = vsel %vm1921_vm8, %v1910_v44, %v1672_v16  ;;  %v1289_v16 = vld [vmem:[#allocation2 + $0xc0] sm:$0xff] }
 0x1c7   : > { %1557 = vrot.lane.b32.xlu0 %v1303_v60, %s2874_s15 }
 0x1c8   : > { %v1546_v20 = vpop.permute.xlu1 %1545 }
 0x1c9   : > { %v3494_v22 = vpop.permute.xlu0 %1483 }
 0x1ca   : > { %1345 = vrot.lane.b32.xlu1 %v1244_v8, %s2872_s12  ;;  %v1843_v8 = vsel %vm543_vm1, %v3317_v2, %v3454_v51 }
 0x1cb   : > { %1809 = vrot.lane.b32.xlu0 %v1319_v18, %s2878_s14 }
 0x1cc   : > { %v1798_v33 = vpop.permute.xlu1 %1797 }
 0x1cd   : > { %v1736_v35 = vpop.permute.xlu0 %1735  ;;  %v1960_v37 = vsel %vm1955_vm10, %v1943_v32, %v1798_v33  ;;  %v1844_v33 = vsel %vm543_vm1, %v3315_v0, %v3468_v58 }
 0x1ce   : > { %1535 = vrot.lane.b32.xlu1 %v1245_v29, %s2874_s15  ;;  %2648 = vmatprep.mubr.msk.f32.mxu1 %vm1988_vm11, %v1960_v37  ;;  %v1944_v48 = vsel %vm1938_vm9, %v1927_v46, %v1736_v35  ;;  %v1290_v35 = vld [vmem:[#allocation2 + $0xc8] sm:$0xff] }
 0x1cf   : > { %1369 = vrot.lane.b32.xlu0 %v1303_v60, %s2872_s12 }
 0x1d0   : > { %v1548_v41 = vpop.permute.xlu1 %1547 }
 0x1d1   : > { %v3514_v42 = vpop.permute.xlu0 %1357 }
 0x1d2   : > { %1597 = vrot.lane.b32.xlu1 %v1260_v39, %s2875_s23 }
 0x1d3   : > { %1559 = vrot.lane.b32.xlu0 %v1304_v12, %s2874_s15 }
 0x1d4   : > { %v1800_v49 = vpop.permute.xlu1 %1799 }
 0x1d5   : > { %v1610_v52 = vpop.permute.xlu0 %1609  ;;  %v1961_v47 = vsel %vm1955_vm10, %v1944_v48, %v1800_v49 }
 0x1d6   : > { %1811 = vrot.lane.b32.xlu1 %v1320_v45, %s2878_s14  ;;  %2649 = vmatmul.mubr.msk.f32.vlgmr.msra.gmra.mrb[4].mxu1 %vm1988_vm11, %v1961_v47 }
 0x1d7   : > { %1621 = vrot.lane.b32.xlu0 %v1319_v18, %s2875_s23 }
 0x1d8   : > { %v3526_v54 = vpop.permute.xlu1 %1421 }
 0x1d9   : > { %v3528_v55 = vpop.permute.xlu0 %1359 }
 0x1da   : > { %1371 = vrot.lane.b32.xlu1 %v1304_v12, %s2872_s12  ;;  %v1860_v12 = vsel %vm1853_vm4, %v1843_v8, %v3466_v57  ;;  %v1845_v8 = vsel %vm543_vm1, %v3353_v14, %v3514_v42 }
 0x1db   : > { %1347 = vrot.lane.b32.xlu0 %v1245_v29, %s2872_s12  ;;  %v1877_v19 = vsel %vm1870_vm5, %v1860_v12, %v3479_v9 }
 0x1dc   : > { %v1674_v60 = vpop.permute.xlu1 %1673  ;;  %v1894_v25 = vsel %vm1887_vm6, %v1877_v19, %v1546_v20  ;;  %v1861_v20 = vsel %vm1853_vm4, %v1844_v33, %v3481_v10 }
 0x1dd   : > { %v1612_v61 = vpop.permute.xlu0 %1611  ;;  %v1911_v27 = vsel %vm1904_vm7, %v1894_v25, %v1610_v52  ;;  %v1878_v37 = vsel %vm1870_vm5, %v1861_v20, %v3494_v22  ;;  %v1306_v52 = vld [vmem:[#allocation2 + $0xc9] sm:$0xff] }
 0x1de   : > { %1433 = vrot.lane.b32.xlu1 %v1319_v18, %s2871_s29  ;;  %v1928_v57 = vsel %vm1921_vm8, %v1911_v27, %v1674_v60  ;;  %v1895_v40 = vsel %vm1887_vm6, %v1878_v37, %v1548_v41 }
 0x1df   : > { %1409 = vrot.lane.b32.xlu0 %v1260_v39, %s2871_s29  ;;  %v1912_v58 = vsel %vm1904_vm7, %v1895_v40, %v1612_v61  ;;  %v1321_v61 = vld [vmem:[#allocation2 + $0xc2] sm:$0xff] }
 0x1e0   : > { %v3537_v13 = vpop.permute.xlu1 %1485 }
 0x1e1   : > { %v3539_v15 = vpop.permute.xlu0 %1423 }
 0x1e2   : > { %1623 = vrot.lane.b32.xlu1 %v1320_v45, %s2875_s23 }
 0x1e3   : > { %1599 = vrot.lane.b32.xlu0 %v1261_v62, %s2875_s23 }
 0x1e4   : > { %v1738_v17 = vpop.permute.xlu1 %1737 }
 0x1e5   : > { %v1676_v18 = vpop.permute.xlu0 %1675  ;;  %v1945_v9 = vsel %vm1938_vm9, %v1928_v57, %v1738_v17 }
 0x1e6   : > { %1685 = vrot.lane.b32.xlu1 %v1289_v16, %s2876_s26  ;;  %v1929_v10 = vsel %vm1921_vm8, %v1912_v58, %v1676_v18 }
 0x1e7   : > { %1661 = vrot.lane.b32.xlu0 %v3483_v11, %s2876_s26 }
 0x1e8   : > { %v1550_v51 = vpop.permute.xlu1 %1549 }
 0x1e9   : > { %v3550_v24 = vpop.permute.xlu0 %1487 }
 0x1ea   : > { %1435 = vrot.lane.b32.xlu1 %v1320_v45, %s2871_s29 }
 0x1eb   : > { %1411 = vrot.lane.b32.xlu0 %v1261_v62, %s2871_s29 }
 0x1ec   : > { %v1802_v29 = vpop.permute.xlu1 %1801 }
 0x1ed   : > { %v1740_v31 = vpop.permute.xlu0 %1739  ;;  %v1962_v32 = vsel %vm1955_vm10, %v1945_v9, %v1802_v29 }
 0x1ee   : > { %1497 = vrot.lane.b32.xlu1 %v1289_v16, %s2873_s25  ;;  %2651 = vmatprep.mubr.msk.f32.mxu1 %vm1988_vm11, %v1962_v32  ;;  %v1946_v43 = vsel %vm1938_vm9, %v1929_v10, %v1740_v31 }
 0x1ef   : > { %1473 = vrot.lane.b32.xlu0 %v3483_v11, %s2873_s25  ;;  %v1305_v11 = vld [vmem:[#allocation2 + $0xc1] sm:$0xff] }
 0x1f0   : > { %v1552_v38 = vpop.permute.xlu1 %1551 }
 0x1f1   : > { %v3570_v39 = vpop.permute.xlu0 %1361 }
 0x1f2   : > { %1687 = vrot.lane.b32.xlu1 %v1290_v35, %s2876_s26 }
 0x1f3   : > { %1663 = vrot.lane.b32.xlu0 %v3496_v23, %s2876_s26 }
 0x1f4   : > { %v1804_v44 = vpop.permute.xlu1 %1803 }
 0x1f5   : > { %v1614_v46 = vpop.permute.xlu0 %1613  ;;  %v1963_v22 = vsel %vm1955_vm10, %v1946_v43, %v1804_v44  ;;  %v1181_v43 = vld [vmem:[#allocation2 + $0x8] sm:$0xff]  ;;  %v1307_v44 = vld [vmem:[#allocation2 + $0xd9] sm:$0xff] }
 0x1f6   : > { %1749 = vrot.lane.b32.xlu1 %v1305_v11, %s2877_s24  ;;  %2652 = vmatmul.mubr.msk.f32.gmra.mrb[6].mxu1 %vm1988_vm11, %v1963_v22 }
 0x1f7   : > { %1725 = vrot.lane.b32.xlu0 %v3301_v4, %s2877_s24 }
 0x1f8   : > { %v3584_v41 = vpop.permute.xlu1 %1425 }
 0x1f9   : > { %v3586_v45 = vpop.permute.xlu0 %1363 }
 0x1fa   : > { %1499 = vrot.lane.b32.xlu1 %v1290_v35, %s2873_s25  ;;  %v1180_v35 = vld [vmem:[#allocation2] sm:$0xff] }
 0x1fb   : > { %1475 = vrot.lane.b32.xlu0 %v3496_v23, %s2873_s25 }
 0x1fc   : > { %v1678_v48 = vpop.permute.xlu1 %1677 }
 0x1fd   : > { %v1616_v49 = vpop.permute.xlu0 %1615 }
 0x1fe   : > { %1561 = vrot.lane.b32.xlu1 %v1305_v11, %s2874_s15 }
 0x1ff   : > { %1537 = vrot.lane.b32.xlu0 %v3301_v4, %s2874_s15  ;;  %v1862_v4 = vsel %vm1853_vm4, %v1845_v8, %v3526_v54 }
 0x200   : > { %v3594_v47 = vpop.permute.xlu1 %1489  ;;  %v1879_v12 = vsel %vm1870_vm5, %v1862_v4, %v3537_v13 }
 0x201   : > { %v3596_v60 = vpop.permute.xlu0 %1427  ;;  %v1896_v18 = vsel %vm1887_vm6, %v1879_v12, %v1550_v51  ;;  %v1322_v51 = vld [vmem:[#allocation2 + $0xca] sm:$0xff]  ;;  %v1324_v12 = vld [vmem:[#allocation2 + $0xe2] sm:$0xff] }
 0x202   : > { %1751 = vrot.lane.b32.xlu1 %v1306_v52, %s2877_s24  ;;  %v1913_v19 = vsel %vm1904_vm7, %v1896_v18, %v1614_v46 }
 0x203   : > { %1727 = vrot.lane.b32.xlu0 %v3309_v63, %s2877_s24  ;;  %v1930_v14 = vsel %vm1921_vm8, %v1913_v19, %v1678_v48 }
 0x204   : > { %v1742_v62 = vpop.permute.xlu1 %1741 }
 0x205   : > { %v1680_v23 = vpop.permute.xlu0 %1679  ;;  %v1947_v42 = vsel %vm1938_vm9, %v1930_v14, %v1742_v62 }
 0x206   : > { %1813 = vrot.lane.b32.xlu1 %v1321_v61, %s2878_s14 }
 0x207   : > { %1789 = vrot.lane.b32.xlu0 %v3299_v3, %s2878_s14 }
 0x208   : > { %v3611_v16 = vpop.permute.xlu1 %1553 }
 0x209   : > { %v3613_v17 = vpop.permute.xlu0 %1491 }
 0x20a   : > { %1563 = vrot.lane.b32.xlu1 %v1306_v52, %s2874_s15 }
 0x20b   : > { %1539 = vrot.lane.b32.xlu0 %v3309_v63, %s2874_s15  ;;  %v1846_v63 = vsel %vm543_vm1, %v3377_v21, %v3528_v55  ;;  %v1291_v55 = vld [vmem:[#allocation2 + $0xd8] sm:$0xff]  ;;  %s2879_s15 = smov 4  }
 0x20c   : > { %v1806_v54 = vpop.permute.xlu1 %1805  ;;  %v1863_v9 = vsel %vm1853_vm4, %v1846_v63, %v3539_v15 }
 0x20d   : > { %v1744_v25 = vpop.permute.xlu0 %1743  ;;  %v1964_v13 = vsel %vm1955_vm10, %v1947_v42, %v1806_v54 }
 0x20e   : > { %1625 = vrot.lane.b32.xlu1 %v1321_v61, %s2875_s23  ;;  %2654 = vmatprep.mubr.msk.f32.mxu1 %vm1988_vm11, %v1964_v13 }
 0x20f   : > { %1601 = vrot.lane.b32.xlu0 %v3299_v3, %s2875_s23  ;;  %v1880_v3 = vsel %vm1870_vm5, %v1863_v9, %v3550_v24 }
 0x210   : > { %v1366_v27 = vpop.permute.xlu1 %1365  ;;  %v1897_v32 = vsel %vm1887_vm6, %v1880_v3, %v1552_v38  ;;  %v1292_v38 = vld [vmem:[#allocation2 + $0xe0] sm:$0xff] }
 0x211   : > { %v1342_v57 = vpop.permute.xlu0 %1341  ;;  %v1914_v33 = vsel %vm1904_vm7, %v1897_v32, %v1616_v49  ;;  %v1849_v11 = vsel %vm543_vm1, %v3420_v34, %v1366_v27  ;;  %v1308_v49 = vld [vmem:[#allocation2 + $0xe1] sm:$0xff] }
 0x212   : > { %1815 = vrot.lane.b32.xlu1 %v1322_v51, %s2878_s14  ;;  %v1931_v21 = vsel %vm1921_vm8, %v1914_v33, %v1680_v23 }
 0x213   : > { %1791 = vrot.lane.b32.xlu0 %v3307_v26, %s2878_s14  ;;  %v1948_v15 = vsel %vm1938_vm9, %v1931_v21, %v1744_v25 }
 0x214   : > { %v3637_v29 = vpop.permute.xlu1 %1617 }
 0x215   : > { %v3639_v31 = vpop.permute.xlu0 %1555 }
 0x216   : > { %1627 = vrot.lane.b32.xlu1 %v1322_v51, %s2875_s23  ;;  %v1847_v51 = vsel %vm543_vm1, %v3396_v28, %v3570_v39 }
 0x217   : > { %1603 = vrot.lane.b32.xlu0 %v3307_v26, %s2875_s23  ;;  %v1837_v26 = vsel %vm543_vm1, %v1180_v35, %v1342_v57  ;;  %v1864_v27 = vsel %vm1853_vm4, %v1847_v51, %v3584_v41  ;;  %s2539_s23 = sshll.u32 %s2852_s20, 4 }
 0x218   : > { %v1344_v20 = vpop.permute.xlu1 %1343 }
 0x219   : > { %v1808_v24 = vpop.permute.xlu0 %1807  ;;  %v1838_v48 = vsel %vm543_vm1, %v1181_v43, %v1344_v20 }
 0x21a   : > { %v1965_v37 = vsel %vm1955_vm10, %v1948_v15, %v1808_v24  ;;  %1689 = vrot.lane.b32.xlu1 %v1291_v55, %s2876_s26 }
 0x21b   : > { %1665 = vrot.lane.b32.xlu0 %v3317_v2, %s2876_s26  ;;  %2655 = vmatmul.mubr.msk.f32.gmra.mrb[8].mxu1 %vm1988_vm11, %v1965_v37 }
 0x21c   : > { %v1406_v40 = vpop.permute.xlu1 %1405 }
 0x21d   : > { %v1368_v58 = vpop.permute.xlu0 %1367  ;;  %v1854_v10 = vsel %vm1853_vm4, %v1837_v26, %v1406_v40 }
 0x21e   : > { %1691 = vrot.lane.b32.xlu1 %v1292_v38, %s2876_s26  ;;  %v1850_v62 = vsel %vm543_vm1, %v3428_v36, %v1368_v58 }
 0x21f   : > { %1667 = vrot.lane.b32.xlu0 %v3315_v0, %s2876_s26  ;;  %v1323_v0 = vld [vmem:[#allocation2 + $0xda] sm:$0xff]  ;;  %s2527_s26 = sshll.u32 %s2856_s21, 5  ;;  %s2312_s21 = sshll.u32 %s3289_s28, 4  ;;  %s3879_s21 = int_to_ptr.vmem [resolvable:$true] %s2312_s21 }
 0x220   : > { %v1620_v2 = vpop.permute.xlu1 %1619  ;;  %s2309_s5 = sadd.s32 %s2539_s23, %s2527_s26  ;;  %s2774_s13 = scalar_lea.vmem %s3879_s21, 2048 }
 0x221   : > { %v1430_v46 = vpop.permute.xlu0 %1429  ;;  %s2528_s20 = sshll.u32 %s2309_s5, 7  ;;  %p2775_p6 = scmp.ne.s32.totalorder %s3879_s21, %s2774_s13 }
 0x222   : > { %v1866_v22 = vsel %vm1853_vm4, %v1849_v11, %v1430_v46  ;;  %1753 = vrot.lane.b32.xlu1 %v1307_v44, %s2877_s24  ;;  %s3876_s22 = scalar_lea.hbm %s3952_s11, %s2528_s20 }
 0x223   : > { %1729 = vrot.lane.b32.xlu0 %v3323_v5, %s2877_s24  ;;  %p2776_p7 = pnand %p2775_p6, %p2993_p3 }
 0x224   : > { %v1408_v34 = vpop.permute.xlu1 %1407 }
 0x225   : > { %v1682_v52 = vpop.permute.xlu0 %1681  ;;  %v1855_v61 = vsel %vm1853_vm4, %v1838_v48, %v1408_v34  ;;  %p2777_p9 = pneg %p2776_p7 }
 0x226   : > { %1755 = vrot.lane.b32.xlu1 %v1308_v49, %s2877_s24 }
 0x227   : > { %1731 = vrot.lane.b32.xlu0 %v3331_v7, %s2877_s24 }
 0x228   : > { %v1470_v23 = vpop.permute.xlu1 %1469 }
 0x229   : > { %v1432_v8 = vpop.permute.xlu0 %1431  ;;  %v1871_v4 = vsel %vm1870_vm5, %v1854_v10, %v1470_v23 }
 0x22a   : > { %v1867_v5 = vsel %vm1853_vm4, %v1850_v62, %v1432_v8  ;;  %1817 = vrot.lane.b32.xlu1 %v1323_v0, %s2878_s14 }
 0x22b   : > { %1793 = vrot.lane.b32.xlu0 %v3329_v6, %s2878_s14 }
 0x22c   : > { %v1684_v18 = vpop.permute.xlu1 %1683 }
 0x22d   : > { %v1494_v19 = vpop.permute.xlu0 %1493 }
 0x22e   : > { %v3677_v7 = vsel %vm1870_vm5, %v1866_v22, %v1494_v19  ;;  %1819 = vrot.lane.b32.xlu1 %v1324_v12, %s2878_s14 }
 0x22f   : > { %1795 = vrot.lane.b32.xlu0 %v3355_v1, %s2878_s14  ;;  %v1881_v1 = vsel %vm1870_vm5, %v1864_v27, %v3594_v47  ;;  %s2778_s14 = sshll.u32 %s2880_s16, 4  ;;  %s2779_s14 = int_to_ptr.vmem [resolvable:$false] %s2778_s14 }
 0x230   : > { %v1472_v36 = vpop.permute.xlu1 %1471  ;;  %v1898_v9 = vsel %vm1887_vm6, %v1881_v1, %v3611_v16  ;;  %v1848_v16 = vsel %vm543_vm1, %v3404_v30, %v3586_v45  ;;  %s2780_s29 = scalar_lea.vmem %s2779_s14, 4096  ;;  %p2781_p10 = scmp.lt.s32.totalorder %s3879_s21, %s2779_s14 }
 0x231   : > { %v1746_v14 = vpop.permute.xlu0 %1745  ;;  %v1872_v42 = vsel %vm1870_vm5, %v1855_v61, %v1472_v36  ;;  %v1915_v3 = vsel %vm1904_vm7, %v1898_v9, %v3637_v29  ;;  %v1865_v29 = vsel %vm1853_vm4, %v1848_v16, %v3596_v60  ;;  %p2782_p11 = scmp.lt.s32.totalorder %s2780_s29, %s2774_s13 }
 0x232   : > { %v1932_v32 = vsel %vm1921_vm8, %v1915_v3, %v1682_v52  ;;  %v1882_v15 = vsel %vm1870_vm5, %v1865_v29, %v3613_v17 }
 0x233   : > { %v1949_v33 = vsel %vm1938_vm9, %v1932_v32, %v1746_v14  ;;  %v1899_v35 = vsel %vm1887_vm6, %v1882_v15, %v3639_v31  ;;  %p2783_p12 = por %p2782_p11, %p2781_p10 }
 0x234   : > { %v1534_v54 = vpop.permute.xlu1 %1533  ;;  %v1916_v37 = vsel %vm1904_vm7, %v1899_v35, %v1620_v2 }
 0x235   : > { %v1496_v25 = vpop.permute.xlu0 %1495  ;;  %v1888_v13 = vsel %vm1887_vm6, %v1871_v4, %v1534_v54  ;;  %v1933_v38 = vsel %vm1921_vm8, %v1916_v37, %v1684_v18  ;;  %p2784_p13 = pnand %p2783_p12, %p2777_p9 }
 0x236   : > { %v3685_v6 = vsel %vm1870_vm5, %v1867_v5, %v1496_v25 }
 0x238   : > { %v1748_v57 = vpop.permute.xlu1 %1747 }
 0x239   : > { %v1558_v63 = vpop.permute.xlu0 %1557  ;;  %v1950_v26 = vsel %vm1938_vm9, %v1933_v38, %v1748_v57 }
 0x23a   : > { %v1900_v19 = vsel %vm1887_vm6, %v3677_v7, %v1558_v63 }
 0x23c   : > { %v1346_v21 = vpop.permute.xlu1 %1345 }
 0x23d   : > { %v1810_v28 = vpop.permute.xlu0 %1809  ;;  %v1839_v17 = vsel %vm543_vm1, %v3459_v53, %v1346_v21 }
 0x23e   : > { %v1966_v39 = vsel %vm1955_vm10, %v1949_v33, %v1810_v28 }
 0x23f   : > { %2657 = vmatprep.mubr.msk.f32.mxu1 %vm1988_vm11, %v1966_v39 }
 0x240   : > { %v1536_v41 = vpop.permute.xlu1 %1535 }
 0x241   : > { %v1370_v47 = vpop.permute.xlu0 %1369  ;;  %v1889_v55 = vsel %vm1887_vm6, %v1872_v42, %v1536_v41 }
 0x242   : > { %v1851_v31 = vsel %vm543_vm1, %v3452_v50, %v1370_v47 }
 0x244   : > { %v1598_v20 = vpop.permute.xlu1 %1597 }
 0x245   : > { %v1560_v24 = vpop.permute.xlu0 %1559  ;;  %v1905_v36 = vsel %vm1904_vm7, %v1888_v13, %v1598_v20 }
 0x246   : > { %v1901_v32 = vsel %vm1887_vm6, %v3685_v6, %v1560_v24 }
 0x248   : > { %v1812_v40 = vpop.permute.xlu1 %1811 }
 0x249   : > { %v1622_v58 = vpop.permute.xlu0 %1621  ;;  %v1967_v30 = vsel %vm1955_vm10, %v1950_v26, %v1812_v40 }
 0x24a   : > { %2658 = vmatmul.mubr.msk.f32.gmra.mrb[10].mxu1 %vm1988_vm11, %v1967_v30  ;;  %v1917_v14 = vsel %vm1904_vm7, %v1900_v19, %v1622_v58 }
 0x24c   : > { %v3717_v45 = vpop.permute.xlu1 %1371 }
 0x24d   : > { %v3719_v60 = vpop.permute.xlu0 %1347  ;;  %v1852_v58 = vsel %vm543_vm1, %v3464_v56, %v3717_v45 }
 0x250   : > { %v1434_v10 = vpop.permute.xlu1 %1433 }
 0x251   : > { %v1410_v11 = vpop.permute.xlu0 %1409  ;;  %v1868_v43 = vsel %vm1853_vm4, %v1851_v31, %v1434_v10 }
 0x252   : > { %v1856_v44 = vsel %vm1853_vm4, %v1839_v17, %v1410_v11 }
 0x254   : > { %v1624_v2 = vpop.permute.xlu1 %1623 }
 0x255   : > { %v1600_v46 = vpop.permute.xlu0 %1599  ;;  %v1918_v33 = vsel %vm1904_vm7, %v1901_v32, %v1624_v2 }
 0x256   : > { %v1906_v21 = vsel %vm1904_vm7, %v1889_v55, %v1600_v46  ;;  %v1840_v46 = vsel %vm543_vm1, %v3474_v59, %v3719_v60 }
 0x258   : > { %v1686_v22 = vpop.permute.xlu1 %1685 }
 0x259   : > { %v1662_v48 = vpop.permute.xlu0 %1661  ;;  %v1934_v42 = vsel %vm1921_vm8, %v1917_v14, %v1686_v22 }
 0x25a   : > { %v1922_v54 = vsel %vm1921_vm8, %v1905_v36, %v1662_v48 }
 0x25c   : > { %v3727_v49 = vpop.permute.xlu1 %1435 }
 0x25d   : > { %v3729_v34 = vpop.permute.xlu0 %1411  ;;  %v1869_v56 = vsel %vm1853_vm4, %v1852_v58, %v3727_v49 }
 0x25e   : > { %v1857_v45 = vsel %vm1853_vm4, %v1840_v46, %v3729_v34 }
 0x260   : > { %v1498_v52 = vpop.permute.xlu1 %1497 }
 0x261   : > { %v1474_v61 = vpop.permute.xlu0 %1473  ;;  %v1885_v30 = vsel %vm1870_vm5, %v1868_v43, %v1498_v52 }
 0x262   : > { %v1873_v17 = vsel %vm1870_vm5, %v1856_v44, %v1474_v61 }
 0x264   : > { %v1688_v53 = vpop.permute.xlu1 %1687 }
 0x265   : > { %v1664_v0 = vpop.permute.xlu0 %1663  ;;  %v1935_v28 = vsel %vm1921_vm8, %v1918_v33, %v1688_v53 }
 0x266   : > { %v1923_v39 = vsel %vm1921_vm8, %v1906_v21, %v1664_v0 }
 0x268   : > { %v1750_v62 = vpop.permute.xlu1 %1749 }
 0x269   : > { %v1726_v50 = vpop.permute.xlu0 %1725  ;;  %v1951_v25 = vsel %vm1938_vm9, %v1934_v42, %v1750_v62 }
 0x26a   : > { %v1939_v51 = vsel %vm1938_vm9, %v1922_v54, %v1726_v50 }
 0x26c   : > { %v1500_v23 = vpop.permute.xlu1 %1499 }
 0x26d   : > { %v1476_v8 = vpop.permute.xlu0 %1475  ;;  %v1886_v52 = vsel %vm1870_vm5, %v1869_v56, %v1500_v23  ;;  %v2186_v56 = vld [vmem:[%s3089_s27 + $0x20] sm:$0xff] }
 0x26e   : > { %v1874_v61 = vsel %vm1870_vm5, %v1857_v45, %v1476_v8 }
 0x270   : > { %v1562_v4 = vpop.permute.xlu1 %1561 }
 0x271   : > { %v1538_v5 = vpop.permute.xlu0 %1537  ;;  %v1902_v11 = vsel %vm1887_vm6, %v1885_v30, %v1562_v4 }
 0x272   : > { %v1890_v2 = vsel %vm1887_vm6, %v1873_v17, %v1538_v5 }
 0x274   : > { %v1752_v12 = vpop.permute.xlu1 %1751 }
 0x275   : > { %v1728_v18 = vpop.permute.xlu0 %1727  ;;  %v1952_v41 = vsel %vm1938_vm9, %v1935_v28, %v1752_v12 }
 0x276   : > { %v1940_v47 = vsel %vm1938_vm9, %v1923_v39, %v1728_v18 }
 0x278   : > { %v1814_v27 = vpop.permute.xlu1 %1813 }
 0x279   : > { %v1790_v1 = vpop.permute.xlu0 %1789  ;;  %v1968_v57 = vsel %vm1955_vm10, %v1951_v25, %v1814_v27 }
 0x27a   : > { %v1956_v9 = vsel %vm1955_vm10, %v1939_v51, %v1790_v1  ;;  %2660 = vmatprep.mubr.msk.f32.mxu1 %vm1988_vm11, %v1968_v57 }
 0x27b   : > { %2642 = vmatprep.mubr.msk.f32.mxu0 %vm1988_vm11, %v1956_v9 }
 0x27c   : > { %v1564_v7 = vpop.permute.xlu1 %1563 }
 0x27d   : > { %v1540_v13 = vpop.permute.xlu0 %1539  ;;  %v1903_v62 = vsel %vm1887_vm6, %v1886_v52, %v1564_v7 }
 0x27e   : > { %v1891_v49 = vsel %vm1887_vm6, %v1874_v61, %v1540_v13  ;;  %v2507_v13 = vld [vmem:[%s3951_s10] ss:$0 sm:$0xff]  ;;  %v2185_v61 = vld [vmem:[%s3089_s27 + $0x18] sm:$0xff] }
 0x280   : > { %v1626_v63 = vpop.permute.xlu1 %1625 }
 0x281   : > { %v1602_v3 = vpop.permute.xlu0 %1601  ;;  %v1919_v22 = vsel %vm1904_vm7, %v1902_v11, %v1626_v63 }
 0x282   : > { %v1907_v48 = vsel %vm1904_vm7, %v1890_v2, %v1602_v3 }
 0x284   : > { %v1816_v16 = vpop.permute.xlu1 %1815 }
 0x285   : > { %v1792_v29 = vpop.permute.xlu0 %1791  ;;  %v1969_v15 = vsel %vm1955_vm10, %v1952_v41, %v1816_v16 }
 0x286   : > { %v1957_v20 = vsel %vm1955_vm10, %v1940_v47, %v1792_v29  ;;  %2661 = vmatmul.mubr.msk.f32.gmra.mrb[12].mxu1 %vm1988_vm11, %v1969_v15 }
 0x287   : > { %2643 = vmatmul.mubr.msk.f32.vlgmr.msra.gmra.mrb[16].mxu0 %vm1988_vm11, %v1957_v20 }
 0x288   : > { %v1628_v6 = vpop.permute.xlu1 %1627 }
 0x289   : > { %v1604_v55 = vpop.permute.xlu0 %1603  ;;  %v1920_v4 = vsel %vm1904_vm7, %v1903_v62, %v1628_v6 }
 0x28a   : > { %v1908_v23 = vsel %vm1904_vm7, %v1891_v49, %v1604_v55  ;;  %v2189_v49 = vld [vmem:[%s3089_s27 + $0x38] sm:$0xff] }
 0x28c   : > { %v1690_v24 = vpop.permute.xlu1 %1689 }
 0x28d   : > { %v1666_v35 = vpop.permute.xlu0 %1665  ;;  %v1936_v43 = vsel %vm1921_vm8, %v1919_v22, %v1690_v24 }
 0x28e   : > { %v1924_v44 = vsel %vm1921_vm8, %v1907_v48, %v1666_v35  ;;  %v2187_v48 = vld [vmem:[%s3089_s27 + $0x28] sm:$0xff] }
 0x290   : > { %v1692_v37 = vpop.permute.xlu1 %1691 }
 0x291   : > { %v1668_v38 = vpop.permute.xlu0 %1667  ;;  %v1937_v8 = vsel %vm1921_vm8, %v1920_v4, %v1692_v37 }
 0x292   : > { %v1925_v5 = vsel %vm1921_vm8, %v1908_v23, %v1668_v38 }
 0x294   : > { %v1754_v26 = vpop.permute.xlu1 %1753 }
 0x295   : > { %v1730_v40 = vpop.permute.xlu0 %1729  ;;  %v1953_v59 = vsel %vm1938_vm9, %v1936_v43, %v1754_v26 }
 0x296   : > { %v1941_v60 = vsel %vm1938_vm9, %v1924_v44, %v1730_v40 }
 0x298   : > { %v1756_v31 = vpop.permute.xlu1 %1755 }
 0x299   : > { %v1732_v10 = vpop.permute.xlu0 %1731  ;;  %v1954_v12 = vsel %vm1938_vm9, %v1937_v8, %v1756_v31  ;;  %v2183_v31 = vld [vmem:[%s3089_s27 + $0x8] sm:$0xff] }
 0x29a   : > { %v1942_v18 = vsel %vm1938_vm9, %v1925_v5, %v1732_v10  ;;  %v2182_v10 = vld [vmem:[%s3089_s27] sm:$0xff]  ;;  %v2191_v5 = vld [vmem:[%s3089_s27 + $0x48] sm:$0xff] }
 0x29c   : > { %v1818_v53 = vpop.permute.xlu1 %1817 }
 0x29d   : > { %v1794_v0 = vpop.permute.xlu0 %1793  ;;  %v1970_v34 = vsel %vm1955_vm10, %v1953_v59, %v1818_v53  ;;  %v2184_v59 = vld [vmem:[%s3089_s27 + $0x10] sm:$0xff] }
 0x29e   : > { %v1958_v50 = vsel %vm1955_vm10, %v1941_v60, %v1794_v0  ;;  %2663 = vmatprep.mubr.msk.f32.mxu1 %vm1988_vm11, %v1970_v34  ;;  %v2188_v34 = vld [vmem:[%s3089_s27 + $0x30] sm:$0xff] }
 0x29f   : > { %2645 = vmatprep.mubr.msk.f32.mxu0 %vm1988_vm11, %v1958_v50 }
 0x2a0   : > { %v1820_v19 = vpop.permute.xlu1 %1819 }
 0x2a1   : > { %v1796_v36 = vpop.permute.xlu0 %1795  ;;  %v1971_v14 = vsel %vm1955_vm10, %v1954_v12, %v1820_v19  ;;  %v2190_v12 = vld [vmem:[%s3089_s27 + $0x40] sm:$0xff] }
 0x2a2   : > { %v1959_v42 = vsel %vm1955_vm10, %v1942_v18, %v1796_v36  ;;  %2664 = vmatmul.mubr.msk.f32.gmra.mrb[14].mxu1 %vm1988_vm11, %v1971_v14 }
 0x2a3   : > { %2646 = vmatmul.mubr.msk.f32.gmra.mrb[18].mxu0 %vm1988_vm11, %v1959_v42  ;;  %v2193_v42 = vld [vmem:[%s3089_s27 + $0x58] sm:$0xff] }
 0x2a9   : > { %v2650_v54 = vpop.f32.mrb[4].mxu1 }
 0x2aa   : > { %v2123_v25 = vpop.f32.mrb[5].mxu1  ;;  %v2129_v39 = vadd.f32 %v2650_v54, %v2507_v13  ;;  %v2192_v54 = vld [vmem:[%s3089_s27 + $0x50] sm:$0xff] }
 0x2ab   : > { %v2124_v41 = vadd.f32 %v2507_v13, %v2123_v25 }
 0x2c9   : > { %v2653_v51 = vpop.f32.mrb[6].mxu1 }
 0x2ca   : > { %v2133_v27 = vpop.f32.mrb[7].mxu1  ;;  %v2139_v55 = vadd.f32 %v2653_v51, %v2507_v13 }
 0x2cb   : > { %v2134_v24 = vadd.f32 %v2507_v13, %v2133_v27 }
 0x2ee   : > { %v2656_v1 = vpop.f32.mrb[8].mxu1 }
 0x2ef   : > { %v2143_v57 = vpop.f32.mrb[9].mxu1  ;;  %v2149_v35 = vadd.f32 %v2656_v1, %v2507_v13 }
 0x2f0   : > { %v2144_v37 = vadd.f32 %v2507_v13, %v2143_v57  ;;  %v2195_v57 = vld [vmem:[%s3089_s27 + $0x68] sm:$0xff] }
 0x31d   : > { %v2659_v9 = vpop.f32.mrb[10].mxu1 }
 0x31e   : > { %v2153_v7 = vpop.f32.mrb[11].mxu1  ;;  %v2159_v38 = vadd.f32 %v2659_v9, %v2507_v13  ;;  %v2194_v9 = vld [vmem:[%s3089_s27 + $0x60] sm:$0xff] }
 0x31f   : > { %v2154_v26 = vadd.f32 %v2507_v13, %v2153_v7 }
 0x359   : > { %v2662_v3 = vpop.f32.mrb[12].mxu1 }
 0x35a   : > { %v2644_v63 = vpop.f32.mrb[16].mxu0  ;;  %v2163_v21 = vpop.f32.mrb[13].mxu1  ;;  %v2169_v40 = vadd.f32 %v2662_v3, %v2507_v13 }
 0x35b   : > { %v2109_v32 = vadd.f32 %v2644_v63, %v2507_v13  ;;  %v2103_v33 = vpop.f32.mrb[17].mxu0  ;;  %v2164_v58 = vadd.f32 %v2507_v13, %v2163_v21 }
 0x35c   : > { %v2104_v28 = vadd.f32 %v2507_v13, %v2103_v33  ;;  %v2196_v33 = vld [vmem:[%s3089_s27 + $0x70] sm:$0xff] }
 0x35d   : > { %2216 = vrot.lane.b32.xlu1 %v2109_v32, %s2879_s15  ;;  %v2197_v32 = vld [vmem:[%s3089_s27 + $0x78] sm:$0xff]  ;;  %s3977_s27 = sand.u32 1, %s2844_s18  }
 0x35e   : > { %2214 = vrot.lane.b32.xlu0 %v2104_v28, %s2879_s15  ;;  %s3888_s24 = scalar_lea.sflag [#allocation4], %s3977_s27 }
 0x361   : > { %2224 = vrot.lane.b32.xlu1 %v2129_v39, %s2879_s15 }
 0x362   : > { %2222 = vrot.lane.b32.xlu0 %v2124_v41, %s2879_s15 }
 0x375   : > { %v2665_v16 = vpop.f32.mrb[14].mxu1 }
 0x376   : > { %v2647_v47 = vpop.f32.mrb[18].mxu0  ;;  %v2173_v20 = vpop.f32.mrb[15].mxu1  ;;  %v2179_v30 = vadd.f32 %v2665_v16, %v2507_v13 }
 0x377   : > { %v2119_v29 = vadd.f32 %v2647_v47, %v2507_v13  ;;  %v2113_v15 = vpop.f32.mrb[19].mxu0  ;;  %v2174_v17 = vadd.f32 %v2507_v13, %v2173_v20 }
 0x378   : > { %v2114_v6 = vadd.f32 %v2507_v13, %v2113_v15 }
 0x379   : > { %2220 = vrot.lane.b32.xlu1 %v2119_v29, %s2879_s15 }
 0x37a   : > { %2218 = vrot.lane.b32.xlu0 %v2114_v6, %s2879_s15 }
 0x37d   : > { %2228 = vrot.lane.b32.xlu1 %v2139_v55, %s2879_s15 }
 0x37e   : > { %2226 = vrot.lane.b32.xlu0 %v2134_v24, %s2879_s15 }
 0x381   : > { %2232 = vrot.lane.b32.xlu1 %v2149_v35, %s2879_s15 }
 0x382   : > { %2230 = vrot.lane.b32.xlu0 %v2144_v37, %s2879_s15 }
 0x385   : > { %2236 = vrot.lane.b32.xlu1 %v2159_v38, %s2879_s15 }
 0x386   : > { %2234 = vrot.lane.b32.xlu0 %v2154_v26, %s2879_s15 }
 0x389   : > { %2240 = vrot.lane.b32.xlu1 %v2169_v40, %s2879_s15 }
 0x38a   : > { %2238 = vrot.lane.b32.xlu0 %v2164_v58, %s2879_s15 }
 0x38d   : > { %2244 = vrot.lane.b32.xlu1 %v2179_v30, %s2879_s15 }
 0x38e   : > { %2242 = vrot.lane.b32.xlu0 %v2174_v17, %s2879_s15 }
 0x3cf   : > { %v2217_v11 = vpop.permute.xlu1 %2216 }
 0x3d0   : > { %v2263_v2 = vsel %vm661_vm3, %v2183_v31, %v2217_v11  ;;  %v2215_v46 = vpop.permute.xlu0 %2214 }
 0x3d1   : > { %2280 = vst.msk [vmem:[%s3289_s28 + $0x8] sm:$0xff] %vm2278_vm12, %v2263_v2  ;;  %v2262_v22 = vsel %vm661_vm3, %v2182_v10, %v2215_v46 }
 0x3d2   : > { %2279 = vst.msk [vmem:[%s3289_s28] sm:$0xff] %vm2278_vm12, %v2262_v22 }
 0x3d3   : > { %v2225_v45 = vpop.permute.xlu1 %2224 }
 0x3d4   : > { %v2267_v43 = vsel %vm661_vm3, %v2187_v48, %v2225_v45  ;;  %v2223_v44 = vpop.permute.xlu0 %2222 }
 0x3d5   : > { %2284 = vst.msk [vmem:[%s3289_s28 + $0x28] sm:$0xff] %vm2278_vm12, %v2267_v43  ;;  %v2266_v52 = vsel %vm661_vm3, %v2186_v56, %v2223_v44 }
 0x3d6   : > { %2283 = vst.msk [vmem:[%s3289_s28 + $0x20] sm:$0xff] %vm2278_vm12, %v2266_v52 }
 0x3eb   : > { %v2221_v60 = vpop.permute.xlu1 %2220 }
 0x3ec   : > { %v2265_v53 = vsel %vm661_vm3, %v2185_v61, %v2221_v60  ;;  %v2219_v0 = vpop.permute.xlu0 %2218 }
 0x3ed   : > { %2282 = vst.msk [vmem:[%s3289_s28 + $0x18] sm:$0xff] %vm2278_vm12, %v2265_v53  ;;  %v2264_v62 = vsel %vm661_vm3, %v2184_v59, %v2219_v0 }
 0x3ee   : > { %2281 = vst.msk [vmem:[%s3289_s28 + $0x10] sm:$0xff] %vm2278_vm12, %v2264_v62 }
 0x3ef   : > { %v2229_v50 = vpop.permute.xlu1 %2228 }
 0x3f0   : > { %v2269_v4 = vsel %vm661_vm3, %v2189_v49, %v2229_v50  ;;  %v2227_v23 = vpop.permute.xlu0 %2226 }
 0x3f1   : > { %2286 = vst.msk [vmem:[%s3289_s28 + $0x38] sm:$0xff] %vm2278_vm12, %v2269_v4  ;;  %v2268_v8 = vsel %vm661_vm3, %v2188_v34, %v2227_v23 }
 0x3f2   : > { %2285 = vst.msk [vmem:[%s3289_s28 + $0x30] sm:$0xff] %vm2278_vm12, %v2268_v8 }
 0x3f3   : > { %v2233_v18 = vpop.permute.xlu1 %2232 }
 0x3f4   : > { %v2271_v19 = vsel %vm661_vm3, %v2191_v5, %v2233_v18  ;;  %v2231_v36 = vpop.permute.xlu0 %2230 }
 0x3f5   : > { %2288 = vst.msk [vmem:[%s3289_s28 + $0x48] sm:$0xff] %vm2278_vm12, %v2271_v19  ;;  %v2270_v14 = vsel %vm661_vm3, %v2190_v12, %v2231_v36 }
 0x3f6   : > { %2287 = vst.msk [vmem:[%s3289_s28 + $0x40] sm:$0xff] %vm2278_vm12, %v2270_v14 }
 0x3f7   : > { %v2237_v25 = vpop.permute.xlu1 %2236 }
 0x3f8   : > { %v2273_v51 = vsel %vm661_vm3, %v2193_v42, %v2237_v25  ;;  %v2235_v27 = vpop.permute.xlu0 %2234 }
 0x3f9   : > { %2290 = vst.msk [vmem:[%s3289_s28 + $0x58] sm:$0xff] %vm2278_vm12, %v2273_v51  ;;  %v2272_v1 = vsel %vm661_vm3, %v2192_v54, %v2235_v27 }
 0x3fa   : > { %2289 = vst.msk [vmem:[%s3289_s28 + $0x50] sm:$0xff] %vm2278_vm12, %v2272_v1 }
 0x3fb   : > { %v2241_v7 = vpop.permute.xlu1 %2240 }
 0x3fc   : > { %v2275_v13 = vsel %vm661_vm3, %v2195_v57, %v2241_v7  ;;  %v2239_v63 = vpop.permute.xlu0 %2238 }
 0x3fd   : > { %2292 = vst.msk [vmem:[%s3289_s28 + $0x68] sm:$0xff] %vm2278_vm12, %v2275_v13  ;;  %v2274_v3 = vsel %vm661_vm3, %v2194_v9, %v2239_v63 }
 0x3fe   : > { %2291 = vst.msk [vmem:[%s3289_s28 + $0x60] sm:$0xff] %vm2278_vm12, %v2274_v3 }
 0x3ff   : > { %v2245_v21 = vpop.permute.xlu1 %2244 }
 0x400   : > { %v2277_v28 = vsel %vm661_vm3, %v2197_v32, %v2245_v21  ;;  %v2243_v39 = vpop.permute.xlu0 %2242 }
 0x401   : > { %2294 = vst.msk [vmem:[%s3289_s28 + $0x78] sm:$0xff] %vm2278_vm12, %v2277_v28  ;;  %v2276_v41 = vsel %vm661_vm3, %v2196_v33, %v2243_v39 }
 0x402   : > { %2293 = vst.msk [vmem:[%s3289_s28 + $0x70] sm:$0xff] %vm2278_vm12, %v2276_v41 }
 0x403   : > { %2787 = shalt.err (!%p2784_p13)
}
 0x404   : > { %s2788_s28 = scalar_lea.hbm %s3876_s22, 2048  ;;  %s2792_s23 = scalar_lea.hbm %s3952_s11, 8192 }
 0x405   : > { %p2789_p0 = scmp.ne.s32.totalorder %s3876_s22, %s2788_s28  ;;  %p2793_p4 = scmp.lt.u32.totalorder %s3876_s22, %s3952_s11 }
 0x406   : > { %p2794_p5 = scmp.lt.u32.totalorder %s2792_s23, %s2788_s28  ;;  %p2796_p7 = scmp.lt.u32.totalorder %s2788_s28, %s3876_s22 }
 0x407   : > { %p2790_p1 = pnand %p2789_p0, %p2993_p3 }
 0x408   : > { %p2795_p6 = por %p2794_p5, %p2793_p4 }
 0x409   : > { %p2791_p2 = pneg %p2790_p1 }
 0x40a   : > { %p2797_p9 = por %p2796_p7, %p2795_p6 }
 0x40c   : > { %p2798_p10 = pnand %p2797_p9, %p2791_p2 }
 0x40e   : > { %2801 = shalt.err (!%p2798_p10)
}
 0x40f   : > { %s2881_s20 = smov 128  }
 0x410   : > { %2692 = dma.vmem_to_hbm [thread:$0]  (%p2993_p3), %s3879_s21, 2048, %s3876_s22, %s3888_s24, %s2881_s20, %s2881_s20, %s2872_s12  }
 0x411 PF: > { %s3978_s17 = sld [smem:[#allocation10_spill]]  ;;  %s3979_s19 = sld [smem:[#allocation6_spill]] }
 0x417   : > { %p2698_p11 = scmp.ge.s32.totalorder %s3978_s17, 2  ;;  %s2327_s13 = sand.u32 1, %s3979_s19  }
 0x418   : > { %s2328_s16 = scalar_lea.sflag [#allocation4], %s2327_s13 }
 0x419   : > { %p2695_p12 = pnand %p2698_p11, %p3002_p8 }
 0x41b   : > { %2835 = dma.done.wait (!%p2695_p12), %s2328_s16, 2048  }
 0x41c   : > { %2837 = vsyncadd (!%p2695_p12), %s2328_s16, 4294965248  ;;  %s24_s24 = sadd.s32 1, %s3978_s17   ;;  %s3981_s30 = sld [smem:[#allocation7_spill]] }
 0x41d   : > { %p21_p13 = scmp.ge.s32.totalorder %s24_s24, 6   ;;  %s3982_s19 = sld [smem:[#allocation14_spill]] }
 0x41e   : > { %s3983_s20 = sld [smem:[#allocation8_spill]]  ;;  %s3984_s21 = sld [smem:[#allocation9_spill]] }
 0x41f   : > { %s3985_s22 = sld [smem:[#allocation11_spill]]  ;;  %s3986_s23 = sld [smem:[#allocation12_spill]] }
 0x420   : > { %s3987_s17 = smov %s2844_s18  ;;  %23 = sbr.rel (!%p21_p13) target bundleno = 7 (0x7), region = 116 }
 0x422   : > { %s3988_s18 = smov %s3981_s30 }
 0x427   :  { %2333 = vsyncpa [#allocation4], 1 }
 0x428   :  { %2335 = vsyncpa [#allocation4 + $0x1], 1 }

</bundles_post_ra>
